<compile_context>
chip_gen: v7x
topology: tpu7x:2x2x1
jax: 0.10.0
libtpu: 0.0.40
codegen_flags: <defaults>
</compile_context>

<pallas_src>
import functools
import math

import jax
import jax.numpy as jnp
from jax import lax
from jax.experimental import pallas as pl
from jax.experimental.pallas import tpu as pltpu

D_MODEL = 32
NHEAD = 4
DIM_FF = 64
LN_EPS = 1e-5
NEG_INF = -1e30


# ------------------------------ fused kernel -------------------------------- #

def _decoder_layer_kernel(
    # activations / masks (batch-major slabs)
    tgt_ref, keyin_ref, mem_ref, self_bias_ref, kp_bias_ref,
    # self-attention weights (fused qkv + out proj)
    w_qkv_ref, b_qkv_ref, w_so_ref, b_so_ref,
    # cross-attention weights
    w_cq_ref, b_cq_ref, w_ck_ref, b_ck_ref, w_cv_ref, b_cv_ref, w_co_ref, b_co_ref,
    # feed-forward
    w1_ref, b1_ref, w2_ref, b2_ref,
    # layer norms
    g1_ref, be1_ref, g2_ref, be2_ref, g3_ref, be3_ref,
    # outputs
    out_ref, prekv_ref,
    *, T, S, B, H, dh,
):
    D = H * dh
    scale = 1.0 / math.sqrt(dh)
    f32 = jnp.float32

    def layer_norm(y, g, b):
        mean = jnp.mean(y, axis=-1, keepdims=True)
        var = jnp.mean((y - mean) ** 2, axis=-1, keepdims=True)
        return (y - mean) * lax.rsqrt(var + LN_EPS) * g + b

    def softmax_rows(s):
        s = s - jnp.max(s, axis=-1, keepdims=True)
        p = jnp.exp(s)
        return p * pl.reciprocal(jnp.sum(p, axis=-1, keepdims=True), approx=True)

    def mha(q2d, k2d, v2d, bias, w_out, Tq, Sk):
        # q2d: (B*Tq, D) batch-major; k2d/v2d: (B*Sk, D); bias broadcastable to (B, Tq, Sk)
        # Reshapes split/merge on sublane-tile boundaries only (Tq, Sk multiples of 8).
        q3 = q2d.reshape(B, Tq, D)
        k3 = k2d.reshape(B, Sk, D)
        v3 = v2d.reshape(B, Sk, D)
        acc = jnp.zeros((B * Tq, D), f32)
        for h in range(H):                       # statically unrolled, H = 4
            cols = slice(h * dh, (h + 1) * dh)
            s = jnp.einsum('btd,bsd->bts', q3[:, :, cols], k3[:, :, cols],
                           preferred_element_type=f32) + bias
            p = softmax_rows(s)
            oh = jnp.einsum('bts,bsd->btd', p, v3[:, :, cols],
                            preferred_element_type=f32)
            # concat-over-heads + out-proj folded into a per-head 2-D matmul
            acc = acc + jnp.dot(oh.reshape(B * Tq, dh), w_out[cols, :],
                                preferred_element_type=f32)
        return acc

    x = tgt_ref[...]                             # (B*T, D), batch-major rows

    # ---------------- self attention (custom Attention) ----------------
    qkv = jnp.dot(x, w_qkv_ref[...], preferred_element_type=f32) + b_qkv_ref[...]
    q = qkv[:, :D] * scale
    k = qkv[:, D:2 * D]
    v = qkv[:, 2 * D:]

    # pre_kv: two lane-dense full-slab stores (head split happens in the wrapper)
    prekv_ref[0, :, :] = k
    prekv_ref[1, :, :] = v

    sa = mha(q, k, v, self_bias_ref[...], w_so_ref[...], T, T) + b_so_ref[...]

    # tgt = norm1(tgt + dropout1(tgt2))   (dropout = identity)
    t1 = layer_norm(x + sa, g1_ref[...], be1_ref[...])

    # ---------------- cross attention (nn.MultiheadAttention) ----------------
    q2 = (jnp.dot(t1, w_cq_ref[...], preferred_element_type=f32)
          + b_cq_ref[...]) * scale
    k2 = jnp.dot(keyin_ref[...], w_ck_ref[...], preferred_element_type=f32) + b_ck_ref[...]
    v2 = jnp.dot(mem_ref[...], w_cv_ref[...], preferred_element_type=f32) + b_cv_ref[...]

    ca = mha(q2, k2, v2, kp_bias_ref[...], w_co_ref[...], T, S) + b_co_ref[...]

    # tgt = norm2(tgt + dropout2(tgt2))
    t2 = layer_norm(t1 + ca, g2_ref[...], be2_ref[...])

    # ---------------- feed-forward ----------------
    hdn = jnp.maximum(
        jnp.dot(t2, w1_ref[...], preferred_element_type=f32) + b1_ref[...], 0.0)
    ff = jnp.dot(hdn, w2_ref[...], preferred_element_type=f32) + b2_ref[...]

    # tgt = norm3(tgt + dropout3(tgt2))
    out_ref[...] = layer_norm(t2 + ff, g3_ref[...], be3_ref[...])


# ------------------------------ layer forward ------------------------------- #

def decoder_layer_forward(params, tgt, memory, key_padding_mask, pos, self_attn_mask):
    T, B, D = tgt.shape
    S = memory.shape[0]
    H = NHEAD
    dh = D // H

    # Present batch-major slabs to the fused kernel (tiny layout-only ops;
    # all compute lives inside the single pallas_call below).
    tgt_b = tgt.transpose(1, 0, 2).reshape(B * T, D)
    keyin_b = (memory + pos).transpose(1, 0, 2).reshape(B * S, D)
    mem_b = memory.transpose(1, 0, 2).reshape(B * S, D)
    # Additive masks, pre-shaped so they broadcast in-kernel with no reshapes.
    kp_bias = jnp.where(key_padding_mask, NEG_INF, 0.0).astype(jnp.float32)[:, None, :]  # (B,1,S)
    self_bias = self_attn_mask.astype(jnp.float32)[None, :, :]                           # (1,T,T)

    kernel = functools.partial(_decoder_layer_kernel, T=T, S=S, B=B, H=H, dh=dh)

    out2d, prekv2d = pl.pallas_call(
        kernel,
        out_shape=(
            jax.ShapeDtypeStruct((B * T, D), jnp.float32),
            jax.ShapeDtypeStruct((2, B * T, D), jnp.float32),
        ),
        compiler_params=pltpu.CompilerParams(vmem_limit_bytes=16 * 1024 * 1024),
    )(
        tgt_b, keyin_b, mem_b, self_bias, kp_bias,
        params["w_qkv"], params["b_qkv"].reshape(1, -1),
        params["w_so"], params["b_so"].reshape(1, -1),
        params["w_cq"], params["b_cq"].reshape(1, -1),
        params["w_ck"], params["b_ck"].reshape(1, -1),
        params["w_cv"], params["b_cv"].reshape(1, -1),
        params["w_co"], params["b_co"].reshape(1, -1),
        params["w1"], params["b1"].reshape(1, -1),
        params["w2"], params["b2"].reshape(1, -1),
        params["g1"].reshape(1, -1), params["be1"].reshape(1, -1),
        params["g2"].reshape(1, -1), params["be2"].reshape(1, -1),
        params["g3"].reshape(1, -1), params["be3"].reshape(1, -1),
    )

    out = out2d.reshape(B, T, D).transpose(1, 0, 2)    # back to (T, B, D)
    # Head-major pre_kv layout recovered outside the kernel (pure layout plumbing).
    pre_kv = (prekv2d.reshape(2, B, T, H, dh)
                      .transpose(0, 1, 3, 2, 4)
                      .reshape(2, B * H, T, dh))
    return out, pre_kv


# ------------------------------ parameter init ------------------------------ #

def init_params(key):
    keys = jax.random.split(key, 16)
    s = 0.05

    def rnd(k, shape):
        return s * jax.random.normal(k, shape, dtype=jnp.float32)

    D, F = D_MODEL, DIM_FF
    return {
        # self-attention (fused qkv, column order [q|k|v])
        "w_qkv": rnd(keys[0], (D, 3 * D)), "b_qkv": rnd(keys[1], (3 * D,)),
        "w_so": rnd(keys[2], (D, D)),      "b_so": rnd(keys[3], (D,)),
        # cross-attention
        "w_cq": rnd(keys[4], (D, D)), "b_cq": rnd(keys[5], (D,)),
        "w_ck": rnd(keys[6], (D, D)), "b_ck": rnd(keys[7], (D,)),
        "w_cv": rnd(keys[8], (D, D)), "b_cv": rnd(keys[9], (D,)),
        "w_co": rnd(keys[10], (D, D)), "b_co": rnd(keys[11], (D,)),
        # feed-forward
        "w1": rnd(keys[12], (D, F)), "b1": rnd(keys[13], (F,)),
        "w2": rnd(keys[14], (F, D)), "b2": rnd(keys[15], (D,)),
        # layernorms
        "g1": jnp.ones((D_MODEL,), jnp.float32), "be1": jnp.zeros((D_MODEL,), jnp.float32),
        "g2": jnp.ones((D_MODEL,), jnp.float32), "be2": jnp.zeros((D_MODEL,), jnp.float32),
        "g3": jnp.ones((D_MODEL,), jnp.float32), "be3": jnp.zeros((D_MODEL,), jnp.float32),
    }


# ---------------------------------- main ------------------------------------ #

if __name__ == "__main__":
    T, S, B = 8, 16, 2
    key = jax.random.PRNGKey(0)
    k_p, k_tgt, k_mem, k_pos = jax.random.split(key, 4)

    params = init_params(k_p)
    tgt = jax.random.normal(k_tgt, (T, B, D_MODEL), dtype=jnp.float32)
    memory = jax.random.normal(k_mem, (S, B, D_MODEL), dtype=jnp.float32)
    pos = jax.random.normal(k_pos, (S, B, D_MODEL), dtype=jnp.float32)

    # causal self-attention mask (additive), like autoregressive decoding
    causal = jnp.triu(jnp.ones((T, T), jnp.float32), k=1)
    self_attn_mask = jnp.where(causal > 0, NEG_INF, 0.0).astype(jnp.float32)

    # memory key padding mask: last 3 positions of batch 1 are padding
    key_padding_mask = jnp.zeros((B, S), dtype=bool)
    key_padding_mask = key_padding_mask.at[1, -3:].set(True)

    fwd = jax.jit(decoder_layer_forward)
    out, pre_kv = fwd(params, tgt, memory, key_padding_mask, pos, self_attn_mask)
    out = jax.block_until_ready(out)
    pre_kv = jax.block_until_ready(pre_kv)

    assert out.shape == (T, B, D_MODEL)
    assert pre_kv.shape == (2, B * NHEAD, T, D_MODEL // NHEAD)
    assert bool(jnp.all(jnp.isfinite(out)))
    print("KERNEL_OK")
</pallas_src>

<mosaic_0001>
module attributes {stable_mosaic.version = 11 : i64} {
  func.func @_decoder_layer_kernel(%arg0: memref<16x32xf32, #tpu.memory_space<vmem>>, %arg1: memref<32x32xf32, #tpu.memory_space<vmem>>, %arg2: memref<32x32xf32, #tpu.memory_space<vmem>>, %arg3: memref<1x8x8xf32, #tpu.memory_space<vmem>>, %arg4: memref<2x1x16xf32, #tpu.memory_space<vmem>>, %arg5: memref<32x96xf32, #tpu.memory_space<vmem>>, %arg6: memref<1x96xf32, #tpu.memory_space<vmem>>, %arg7: memref<32x32xf32, #tpu.memory_space<vmem>>, %arg8: memref<1x32xf32, #tpu.memory_space<vmem>>, %arg9: memref<32x32xf32, #tpu.memory_space<vmem>>, %arg10: memref<1x32xf32, #tpu.memory_space<vmem>>, %arg11: memref<32x32xf32, #tpu.memory_space<vmem>>, %arg12: memref<1x32xf32, #tpu.memory_space<vmem>>, %arg13: memref<32x32xf32, #tpu.memory_space<vmem>>, %arg14: memref<1x32xf32, #tpu.memory_space<vmem>>, %arg15: memref<32x32xf32, #tpu.memory_space<vmem>>, %arg16: memref<1x32xf32, #tpu.memory_space<vmem>>, %arg17: memref<32x64xf32, #tpu.memory_space<vmem>>, %arg18: memref<1x64xf32, #tpu.memory_space<vmem>>, %arg19: memref<64x32xf32, #tpu.memory_space<vmem>>, %arg20: memref<1x32xf32, #tpu.memory_space<vmem>>, %arg21: memref<1x32xf32, #tpu.memory_space<vmem>>, %arg22: memref<1x32xf32, #tpu.memory_space<vmem>>, %arg23: memref<1x32xf32, #tpu.memory_space<vmem>>, %arg24: memref<1x32xf32, #tpu.memory_space<vmem>>, %arg25: memref<1x32xf32, #tpu.memory_space<vmem>>, %arg26: memref<1x32xf32, #tpu.memory_space<vmem>>, %arg27: memref<16x32xf32, #tpu.memory_space<vmem>>, %arg28: memref<2x16x32xf32, #tpu.memory_space<vmem>>) attributes {dimension_semantics = [], scalar_prefetch = 0 : i64, scratch_operands = 0 : i64, tpu.core_type = #tpu.core_type<tc>} {
    %c0 = arith.constant 0 : index
    %c0_0 = arith.constant 0 : index
    %0 = vector.load %arg0[%c0, %c0_0] : memref<16x32xf32, #tpu.memory_space<vmem>>, vector<16x32xf32>
    %c0_1 = arith.constant 0 : index
    %c0_2 = arith.constant 0 : index
    %1 = vector.load %arg5[%c0_1, %c0_2] : memref<32x96xf32, #tpu.memory_space<vmem>>, vector<32x96xf32>
    %cst = arith.constant dense<0.000000e+00> : vector<16x96xf32>
    %2 = tpu.matmul %0, %1, %cst {dimension_numbers = #tpu.dot_dimension_numbers<[1], [0], [0], [1], [0, 0, 1, 1], [], []>} : vector<16x32xf32>, vector<32x96xf32>, vector<16x96xf32> -> vector<16x96xf32>
    %c0_3 = arith.constant 0 : index
    %c0_4 = arith.constant 0 : index
    %3 = vector.load %arg6[%c0_3, %c0_4] : memref<1x96xf32, #tpu.memory_space<vmem>>, vector<1x96xf32>
    %4 = vector.broadcast %3 : vector<1x96xf32> to vector<16x96xf32>
    %5 = arith.addf %2, %4 : vector<16x96xf32>
    %6 = vector.extract_strided_slice %5 {offsets = [0, 0], sizes = [16, 32], strides = [1, 1]} : vector<16x96xf32> to vector<16x32xf32>
    %cst_5 = arith.constant 0.353553385 : f32
    %7 = vector.broadcast %cst_5 : f32 to vector<16x32xf32>
    %8 = arith.mulf %6, %7 : vector<16x32xf32>
    %9 = vector.extract_strided_slice %5 {offsets = [0, 32], sizes = [16, 32], strides = [1, 1]} : vector<16x96xf32> to vector<16x32xf32>
    %10 = vector.extract_strided_slice %5 {offsets = [0, 64], sizes = [16, 32], strides = [1, 1]} : vector<16x96xf32> to vector<16x32xf32>
    %c0_6 = arith.constant 0 : index
    %c0_7 = arith.constant 0 : index
    %c0_8 = arith.constant 0 : index
    %11 = vector.load %arg28[%c0_6, %c0_7, %c0_8] : memref<2x16x32xf32, #tpu.memory_space<vmem>>, vector<1x16x32xf32>
    %12 = vector.shape_cast %11 : vector<1x16x32xf32> to vector<16x32xf32>
    %13 = vector.shape_cast %9 : vector<16x32xf32> to vector<1x16x32xf32>
    tpu.vector_store %arg28[%c0_6, %c0_7, %c0_8], %13 {strides = array<i32>} : memref<2x16x32xf32, #tpu.memory_space<vmem>>, vector<1x16x32xf32>,
    %c1 = arith.constant 1 : index
    %c0_9 = arith.constant 0 : index
    %c0_10 = arith.constant 0 : index
    %14 = vector.load %arg28[%c1, %c0_9, %c0_10] : memref<2x16x32xf32, #tpu.memory_space<vmem>>, vector<1x16x32xf32>
    %15 = vector.shape_cast %14 : vector<1x16x32xf32> to vector<16x32xf32>
    %16 = vector.shape_cast %10 : vector<16x32xf32> to vector<1x16x32xf32>
    tpu.vector_store %arg28[%c1, %c0_9, %c0_10], %16 {strides = array<i32>} : memref<2x16x32xf32, #tpu.memory_space<vmem>>, vector<1x16x32xf32>,
    %c0_11 = arith.constant 0 : index
    %c0_12 = arith.constant 0 : index
    %c0_13 = arith.constant 0 : index
    %17 = vector.load %arg3[%c0_11, %c0_12, %c0_13] : memref<1x8x8xf32, #tpu.memory_space<vmem>>, vector<1x8x8xf32>
    %c0_14 = arith.constant 0 : index
    %c0_15 = arith.constant 0 : index
    %18 = vector.load %arg7[%c0_14, %c0_15] : memref<32x32xf32, #tpu.memory_space<vmem>>, vector<32x32xf32>
    %19 = vector.shape_cast %8 : vector<16x32xf32> to vector<2x8x32xf32>
    %20 = vector.shape_cast %9 : vector<16x32xf32> to vector<2x8x32xf32>
    %21 = vector.shape_cast %10 : vector<16x32xf32> to vector<2x8x32xf32>
    %cst_16 = arith.constant 0.000000e+00 : f32
    %22 = vector.broadcast %cst_16 : f32 to vector<16x32xf32>
    %23 = vector.extract_strided_slice %19 {offsets = [0, 0, 0], sizes = [2, 8, 8], strides = [1, 1, 1]} : vector<2x8x32xf32> to vector<2x8x8xf32>
    %24 = vector.extract_strided_slice %20 {offsets = [0, 0, 0], sizes = [2, 8, 8], strides = [1, 1, 1]} : vector<2x8x32xf32> to vector<2x8x8xf32>
    "tpu.trace_start"() <{level = 10 : i32, message = "btd,bsd->bts"}> : () -> ()
    %cst_17 = arith.constant dense<0.000000e+00> : vector<2x8x8xf32>
    %25 = tpu.matmul %23, %24, %cst_17 {dimension_numbers = #tpu.dot_dimension_numbers<[2], [2], [1], [1], [0, 0, 0, 1, 1, 1], [0], [0]>} : vector<2x8x8xf32>, vector<2x8x8xf32>, vector<2x8x8xf32> -> vector<2x8x8xf32>
    "tpu.trace_stop"() : () -> ()
    %26 = vector.broadcast %17 : vector<1x8x8xf32> to vector<2x8x8xf32>
    %27 = arith.addf %25, %26 : vector<2x8x8xf32>
    %cst_18 = arith.constant dense<0xFF800000> : vector<2x8xf32>
    %28 = vector.multi_reduction <maximumf>, %27, %cst_18 [2] : vector<2x8x8xf32> to vector<2x8xf32>
    %29 = vector.shape_cast %28 : vector<2x8xf32> to vector<2x8x1xf32>
    %30 = vector.broadcast %29 : vector<2x8x1xf32> to vector<2x8x8xf32>
    %31 = arith.subf %27, %30 : vector<2x8x8xf32>
    %32 = math.exp %31 : vector<2x8x8xf32>
    %cst_19 = arith.constant dense<0.000000e+00> : vector<2x8xf32>
    %33 = vector.multi_reduction <add>, %32, %cst_19 [2] : vector<2x8x8xf32> to vector<2x8xf32>
    %34 = vector.shape_cast %33 : vector<2x8xf32> to vector<2x8x1xf32>
    %35 = tpu.reciprocal %34 {approx = true} : vector<2x8x1xf32> -> vector<2x8x1xf32>
    %36 = vector.broadcast %35 : vector<2x8x1xf32> to vector<2x8x8xf32>
    %37 = arith.mulf %32, %36 : vector<2x8x8xf32>
    %38 = vector.extract_strided_slice %21 {offsets = [0, 0, 0], sizes = [2, 8, 8], strides = [1, 1, 1]} : vector<2x8x32xf32> to vector<2x8x8xf32>
    "tpu.trace_start"() <{level = 10 : i32, message = "bts,bsd->btd"}> : () -> ()
    %cst_20 = arith.constant dense<0.000000e+00> : vector<2x8x8xf32>
    %39 = tpu.matmul %37, %38, %cst_20 {dimension_numbers = #tpu.dot_dimension_numbers<[2], [1], [1], [2], [0, 0, 0, 1, 1, 2], [0], [0]>} : vector<2x8x8xf32>, vector<2x8x8xf32>, vector<2x8x8xf32> -> vector<2x8x8xf32>
    "tpu.trace_stop"() : () -> ()
    %40 = vector.shape_cast %39 : vector<2x8x8xf32> to vector<16x8xf32>
    %41 = vector.extract_strided_slice %18 {offsets = [0, 0], sizes = [8, 32], strides = [1, 1]} : vector<32x32xf32> to vector<8x32xf32>
    %cst_21 = arith.constant dense<0.000000e+00> : vector<16x32xf32>
    %42 = tpu.matmul %40, %41, %cst_21 {dimension_numbers = #tpu.dot_dimension_numbers<[1], [0], [0], [1], [0, 0, 1, 1], [], []>} : vector<16x8xf32>, vector<8x32xf32>, vector<16x32xf32> -> vector<16x32xf32>
    %43 = arith.addf %22, %42 : vector<16x32xf32>
    %44 = vector.extract_strided_slice %19 {offsets = [0, 0, 8], sizes = [2, 8, 8], strides = [1, 1, 1]} : vector<2x8x32xf32> to vector<2x8x8xf32>
    %45 = vector.extract_strided_slice %20 {offsets = [0, 0, 8], sizes = [2, 8, 8], strides = [1, 1, 1]} : vector<2x8x32xf32> to vector<2x8x8xf32>
    "tpu.trace_start"() <{level = 10 : i32, message = "btd,bsd->bts"}> : () -> ()
    %cst_22 = arith.constant dense<0.000000e+00> : vector<2x8x8xf32>
    %46 = tpu.matmul %44, %45, %cst_22 {dimension_numbers = #tpu.dot_dimension_numbers<[2], [2], [1], [1], [0, 0, 0, 1, 1, 1], [0], [0]>} : vector<2x8x8xf32>, vector<2x8x8xf32>, vector<2x8x8xf32> -> vector<2x8x8xf32>
    "tpu.trace_stop"() : () -> ()
    %47 = vector.broadcast %17 : vector<1x8x8xf32> to vector<2x8x8xf32>
    %48 = arith.addf %46, %47 : vector<2x8x8xf32>
    %cst_23 = arith.constant dense<0xFF800000> : vector<2x8xf32>
    %49 = vector.multi_reduction <maximumf>, %48, %cst_23 [2] : vector<2x8x8xf32> to vector<2x8xf32>
    %50 = vector.shape_cast %49 : vector<2x8xf32> to vector<2x8x1xf32>
    %51 = vector.broadcast %50 : vector<2x8x1xf32> to vector<2x8x8xf32>
    %52 = arith.subf %48, %51 : vector<2x8x8xf32>
    %53 = math.exp %52 : vector<2x8x8xf32>
    %cst_24 = arith.constant dense<0.000000e+00> : vector<2x8xf32>
    %54 = vector.multi_reduction <add>, %53, %cst_24 [2] : vector<2x8x8xf32> to vector<2x8xf32>
    %55 = vector.shape_cast %54 : vector<2x8xf32> to vector<2x8x1xf32>
    %56 = tpu.reciprocal %55 {approx = true} : vector<2x8x1xf32> -> vector<2x8x1xf32>
    %57 = vector.broadcast %56 : vector<2x8x1xf32> to vector<2x8x8xf32>
    %58 = arith.mulf %53, %57 : vector<2x8x8xf32>
    %59 = vector.extract_strided_slice %21 {offsets = [0, 0, 8], sizes = [2, 8, 8], strides = [1, 1, 1]} : vector<2x8x32xf32> to vector<2x8x8xf32>
    "tpu.trace_start"() <{level = 10 : i32, message = "bts,bsd->btd"}> : () -> ()
    %cst_25 = arith.constant dense<0.000000e+00> : vector<2x8x8xf32>
    %60 = tpu.matmul %58, %59, %cst_25 {dimension_numbers = #tpu.dot_dimension_numbers<[2], [1], [1], [2], [0, 0, 0, 1, 1, 2], [0], [0]>} : vector<2x8x8xf32>, vector<2x8x8xf32>, vector<2x8x8xf32> -> vector<2x8x8xf32>
    "tpu.trace_stop"() : () -> ()
    %61 = vector.shape_cast %60 : vector<2x8x8xf32> to vector<16x8xf32>
    %62 = vector.extract_strided_slice %18 {offsets = [8, 0], sizes = [8, 32], strides = [1, 1]} : vector<32x32xf32> to vector<8x32xf32>
    %cst_26 = arith.constant dense<0.000000e+00> : vector<16x32xf32>
    %63 = tpu.matmul %61, %62, %cst_26 {dimension_numbers = #tpu.dot_dimension_numbers<[1], [0], [0], [1], [0, 0, 1, 1], [], []>} : vector<16x8xf32>, vector<8x32xf32>, vector<16x32xf32> -> vector<16x32xf32>
    %64 = arith.addf %43, %63 : vector<16x32xf32>
    %65 = vector.extract_strided_slice %19 {offsets = [0, 0, 16], sizes = [2, 8, 8], strides = [1, 1, 1]} : vector<2x8x32xf32> to vector<2x8x8xf32>
    %66 = vector.extract_strided_slice %20 {offsets = [0, 0, 16], sizes = [2, 8, 8], strides = [1, 1, 1]} : vector<2x8x32xf32> to vector<2x8x8xf32>
    "tpu.trace_start"() <{level = 10 : i32, message = "btd,bsd->bts"}> : () -> ()
    %cst_27 = arith.constant dense<0.000000e+00> : vector<2x8x8xf32>
    %67 = tpu.matmul %65, %66, %cst_27 {dimension_numbers = #tpu.dot_dimension_numbers<[2], [2], [1], [1], [0, 0, 0, 1, 1, 1], [0], [0]>} : vector<2x8x8xf32>, vector<2x8x8xf32>, vector<2x8x8xf32> -> vector<2x8x8xf32>
    "tpu.trace_stop"() : () -> ()
    %68 = vector.broadcast %17 : vector<1x8x8xf32> to vector<2x8x8xf32>
    %69 = arith.addf %67, %68 : vector<2x8x8xf32>
    %cst_28 = arith.constant dense<0xFF800000> : vector<2x8xf32>
    %70 = vector.multi_reduction <maximumf>, %69, %cst_28 [2] : vector<2x8x8xf32> to vector<2x8xf32>
    %71 = vector.shape_cast %70 : vector<2x8xf32> to vector<2x8x1xf32>
    %72 = vector.broadcast %71 : vector<2x8x1xf32> to vector<2x8x8xf32>
    %73 = arith.subf %69, %72 : vector<2x8x8xf32>
    %74 = math.exp %73 : vector<2x8x8xf32>
    %cst_29 = arith.constant dense<0.000000e+00> : vector<2x8xf32>
    %75 = vector.multi_reduction <add>, %74, %cst_29 [2] : vector<2x8x8xf32> to vector<2x8xf32>
    %76 = vector.shape_cast %75 : vector<2x8xf32> to vector<2x8x1xf32>
    %77 = tpu.reciprocal %76 {approx = true} : vector<2x8x1xf32> -> vector<2x8x1xf32>
    %78 = vector.broadcast %77 : vector<2x8x1xf32> to vector<2x8x8xf32>
    %79 = arith.mulf %74, %78 : vector<2x8x8xf32>
    %80 = vector.extract_strided_slice %21 {offsets = [0, 0, 16], sizes = [2, 8, 8], strides = [1, 1, 1]} : vector<2x8x32xf32> to vector<2x8x8xf32>
    "tpu.trace_start"() <{level = 10 : i32, message = "bts,bsd->btd"}> : () -> ()
    %cst_30 = arith.constant dense<0.000000e+00> : vector<2x8x8xf32>
    %81 = tpu.matmul %79, %80, %cst_30 {dimension_numbers = #tpu.dot_dimension_numbers<[2], [1], [1], [2], [0, 0, 0, 1, 1, 2], [0], [0]>} : vector<2x8x8xf32>, vector<2x8x8xf32>, vector<2x8x8xf32> -> vector<2x8x8xf32>
    "tpu.trace_stop"() : () -> ()
    %82 = vector.shape_cast %81 : vector<2x8x8xf32> to vector<16x8xf32>
    %83 = vector.extract_strided_slice %18 {offsets = [16, 0], sizes = [8, 32], strides = [1, 1]} : vector<32x32xf32> to vector<8x32xf32>
    %cst_31 = arith.constant dense<0.000000e+00> : vector<16x32xf32>
    %84 = tpu.matmul %82, %83, %cst_31 {dimension_numbers = #tpu.dot_dimension_numbers<[1], [0], [0], [1], [0, 0, 1, 1], [], []>} : vector<16x8xf32>, vector<8x32xf32>, vector<16x32xf32> -> vector<16x32xf32>
    %85 = arith.addf %64, %84 : vector<16x32xf32>
    %86 = vector.extract_strided_slice %19 {offsets = [0, 0, 24], sizes = [2, 8, 8], strides = [1, 1, 1]} : vector<2x8x32xf32> to vector<2x8x8xf32>
    %87 = vector.extract_strided_slice %20 {offsets = [0, 0, 24], sizes = [2, 8, 8], strides = [1, 1, 1]} : vector<2x8x32xf32> to vector<2x8x8xf32>
    "tpu.trace_start"() <{level = 10 : i32, message = "btd,bsd->bts"}> : () -> ()
    %cst_32 = arith.constant dense<0.000000e+00> : vector<2x8x8xf32>
    %88 = tpu.matmul %86, %87, %cst_32 {dimension_numbers = #tpu.dot_dimension_numbers<[2], [2], [1], [1], [0, 0, 0, 1, 1, 1], [0], [0]>} : vector<2x8x8xf32>, vector<2x8x8xf32>, vector<2x8x8xf32> -> vector<2x8x8xf32>
    "tpu.trace_stop"() : () -> ()
    %89 = vector.broadcast %17 : vector<1x8x8xf32> to vector<2x8x8xf32>
    %90 = arith.addf %88, %89 : vector<2x8x8xf32>
    %cst_33 = arith.constant dense<0xFF800000> : vector<2x8xf32>
    %91 = vector.multi_reduction <maximumf>, %90, %cst_33 [2] : vector<2x8x8xf32> to vector<2x8xf32>
    %92 = vector.shape_cast %91 : vector<2x8xf32> to vector<2x8x1xf32>
    %93 = vector.broadcast %92 : vector<2x8x1xf32> to vector<2x8x8xf32>
    %94 = arith.subf %90, %93 : vector<2x8x8xf32>
    %95 = math.exp %94 : vector<2x8x8xf32>
    %cst_34 = arith.constant dense<0.000000e+00> : vector<2x8xf32>
    %96 = vector.multi_reduction <add>, %95, %cst_34 [2] : vector<2x8x8xf32> to vector<2x8xf32>
    %97 = vector.shape_cast %96 : vector<2x8xf32> to vector<2x8x1xf32>
    %98 = tpu.reciprocal %97 {approx = true} : vector<2x8x1xf32> -> vector<2x8x1xf32>
    %99 = vector.broadcast %98 : vector<2x8x1xf32> to vector<2x8x8xf32>
    %100 = arith.mulf %95, %99 : vector<2x8x8xf32>
    %101 = vector.extract_strided_slice %21 {offsets = [0, 0, 24], sizes = [2, 8, 8], strides = [1, 1, 1]} : vector<2x8x32xf32> to vector<2x8x8xf32>
    "tpu.trace_start"() <{level = 10 : i32, message = "bts,bsd->btd"}> : () -> ()
    %cst_35 = arith.constant dense<0.000000e+00> : vector<2x8x8xf32>
    %102 = tpu.matmul %100, %101, %cst_35 {dimension_numbers = #tpu.dot_dimension_numbers<[2], [1], [1], [2], [0, 0, 0, 1, 1, 2], [0], [0]>} : vector<2x8x8xf32>, vector<2x8x8xf32>, vector<2x8x8xf32> -> vector<2x8x8xf32>
    "tpu.trace_stop"() : () -> ()
    %103 = vector.shape_cast %102 : vector<2x8x8xf32> to vector<16x8xf32>
    %104 = vector.extract_strided_slice %18 {offsets = [24, 0], sizes = [8, 32], strides = [1, 1]} : vector<32x32xf32> to vector<8x32xf32>
    %cst_36 = arith.constant dense<0.000000e+00> : vector<16x32xf32>
    %105 = tpu.matmul %103, %104, %cst_36 {dimension_numbers = #tpu.dot_dimension_numbers<[1], [0], [0], [1], [0, 0, 1, 1], [], []>} : vector<16x8xf32>, vector<8x32xf32>, vector<16x32xf32> -> vector<16x32xf32>
    %106 = arith.addf %85, %105 : vector<16x32xf32>
    %c0_37 = arith.constant 0 : index
    %c0_38 = arith.constant 0 : index
    %107 = vector.load %arg8[%c0_37, %c0_38] : memref<1x32xf32, #tpu.memory_space<vmem>>, vector<1x32xf32>
    %108 = vector.broadcast %107 : vector<1x32xf32> to vector<16x32xf32>
    %109 = arith.addf %106, %108 : vector<16x32xf32>
    %110 = arith.addf %0, %109 : vector<16x32xf32>
    %c0_39 = arith.constant 0 : index
    %c0_40 = arith.constant 0 : index
    %111 = vector.load %arg21[%c0_39, %c0_40] : memref<1x32xf32, #tpu.memory_space<vmem>>, vector<1x32xf32>
    %c0_41 = arith.constant 0 : index
    %c0_42 = arith.constant 0 : index
    %112 = vector.load %arg22[%c0_41, %c0_42] : memref<1x32xf32, #tpu.memory_space<vmem>>, vector<1x32xf32>
    %cst_43 = arith.constant dense<0.000000e+00> : vector<16xf32>
    %113 = vector.multi_reduction <add>, %110, %cst_43 [1] : vector<16x32xf32> to vector<16xf32>
    %114 = vector.shape_cast %113 : vector<16xf32> to vector<16x1xf32>
    %cst_44 = arith.constant 3.200000e+01 : f32
    %115 = vector.broadcast %cst_44 : f32 to vector<16x1xf32>
    %116 = arith.divf %114, %115 : vector<16x1xf32>
    %117 = vector.broadcast %116 : vector<16x1xf32> to vector<16x32xf32>
    %118 = arith.subf %110, %117 : vector<16x32xf32>
    %119 = arith.mulf %118, %118 : vector<16x32xf32>
    %cst_45 = arith.constant dense<0.000000e+00> : vector<16xf32>
    %120 = vector.multi_reduction <add>, %119, %cst_45 [1] : vector<16x32xf32> to vector<16xf32>
    %121 = vector.shape_cast %120 : vector<16xf32> to vector<16x1xf32>
    %cst_46 = arith.constant 3.200000e+01 : f32
    %122 = vector.broadcast %cst_46 : f32 to vector<16x1xf32>
    %123 = arith.divf %121, %122 : vector<16x1xf32>
    %124 = vector.broadcast %116 : vector<16x1xf32> to vector<16x32xf32>
    %125 = arith.subf %110, %124 : vector<16x32xf32>
    %cst_47 = arith.constant 9.99999974E-6 : f32
    %126 = vector.broadcast %cst_47 : f32 to vector<16x1xf32>
    %127 = arith.addf %123, %126 : vector<16x1xf32>
    %128 = math.rsqrt %127 : vector<16x1xf32>
    %129 = vector.broadcast %128 : vector<16x1xf32> to vector<16x32xf32>
    %130 = arith.mulf %125, %129 : vector<16x32xf32>
    %131 = vector.broadcast %111 : vector<1x32xf32> to vector<16x32xf32>
    %132 = arith.mulf %130, %131 : vector<16x32xf32>
    %133 = vector.broadcast %112 : vector<1x32xf32> to vector<16x32xf32>
    %134 = arith.addf %132, %133 : vector<16x32xf32>
    %c0_48 = arith.constant 0 : index
    %c0_49 = arith.constant 0 : index
    %135 = vector.load %arg9[%c0_48, %c0_49] : memref<32x32xf32, #tpu.memory_space<vmem>>, vector<32x32xf32>
    %cst_50 = arith.constant dense<0.000000e+00> : vector<16x32xf32>
    %136 = tpu.matmul %134, %135, %cst_50 {dimension_numbers = #tpu.dot_dimension_numbers<[1], [0], [0], [1], [0, 0, 1, 1], [], []>} : vector<16x32xf32>, vector<32x32xf32>, vector<16x32xf32> -> vector<16x32xf32>
    %c0_51 = arith.constant 0 : index
    %c0_52 = arith.constant 0 : index
    %137 = vector.load %arg10[%c0_51, %c0_52] : memref<1x32xf32, #tpu.memory_space<vmem>>, vector<1x32xf32>
    %138 = vector.broadcast %137 : vector<1x32xf32> to vector<16x32xf32>
    %139 = arith.addf %136, %138 : vector<16x32xf32>
    %cst_53 = arith.constant 0.353553385 : f32
    %140 = vector.broadcast %cst_53 : f32 to vector<16x32xf32>
    %141 = arith.mulf %139, %140 : vector<16x32xf32>
    %c0_54 = arith.constant 0 : index
    %c0_55 = arith.constant 0 : index
    %142 = vector.load %arg1[%c0_54, %c0_55] : memref<32x32xf32, #tpu.memory_space<vmem>>, vector<32x32xf32>
    %c0_56 = arith.constant 0 : index
    %c0_57 = arith.constant 0 : index
    %143 = vector.load %arg11[%c0_56, %c0_57] : memref<32x32xf32, #tpu.memory_space<vmem>>, vector<32x32xf32>
    %cst_58 = arith.constant dense<0.000000e+00> : vector<32x32xf32>
    %144 = tpu.matmul %142, %143, %cst_58 {dimension_numbers = #tpu.dot_dimension_numbers<[1], [0], [0], [1], [0, 0, 1, 1], [], []>} : vector<32x32xf32>, vector<32x32xf32>, vector<32x32xf32> -> vector<32x32xf32>
    %c0_59 = arith.constant 0 : index
    %c0_60 = arith.constant 0 : index
    %145 = vector.load %arg12[%c0_59, %c0_60] : memref<1x32xf32, #tpu.memory_space<vmem>>, vector<1x32xf32>
    %146 = vector.broadcast %145 : vector<1x32xf32> to vector<32x32xf32>
    %147 = arith.addf %144, %146 : vector<32x32xf32>
    %c0_61 = arith.constant 0 : index
    %c0_62 = arith.constant 0 : index
    %148 = vector.load %arg2[%c0_61, %c0_62] : memref<32x32xf32, #tpu.memory_space<vmem>>, vector<32x32xf32>
    %c0_63 = arith.constant 0 : index
    %c0_64 = arith.constant 0 : index
    %149 = vector.load %arg13[%c0_63, %c0_64] : memref<32x32xf32, #tpu.memory_space<vmem>>, vector<32x32xf32>
    %cst_65 = arith.constant dense<0.000000e+00> : vector<32x32xf32>
    %150 = tpu.matmul %148, %149, %cst_65 {dimension_numbers = #tpu.dot_dimension_numbers<[1], [0], [0], [1], [0, 0, 1, 1], [], []>} : vector<32x32xf32>, vector<32x32xf32>, vector<32x32xf32> -> vector<32x32xf32>
    %c0_66 = arith.constant 0 : index
    %c0_67 = arith.constant 0 : index
    %151 = vector.load %arg14[%c0_66, %c0_67] : memref<1x32xf32, #tpu.memory_space<vmem>>, vector<1x32xf32>
    %152 = vector.broadcast %151 : vector<1x32xf32> to vector<32x32xf32>
    %153 = arith.addf %150, %152 : vector<32x32xf32>
    %c0_68 = arith.constant 0 : index
    %c0_69 = arith.constant 0 : index
    %c0_70 = arith.constant 0 : index
    %154 = vector.load %arg4[%c0_68, %c0_69, %c0_70] : memref<2x1x16xf32, #tpu.memory_space<vmem>>, vector<2x1x16xf32>
    %c0_71 = arith.constant 0 : index
    %c0_72 = arith.constant 0 : index
    %155 = vector.load %arg15[%c0_71, %c0_72] : memref<32x32xf32, #tpu.memory_space<vmem>>, vector<32x32xf32>
    %156 = vector.shape_cast %141 : vector<16x32xf32> to vector<2x8x32xf32>
    %157 = vector.shape_cast %147 : vector<32x32xf32> to vector<2x16x32xf32>
    %158 = vector.shape_cast %153 : vector<32x32xf32> to vector<2x16x32xf32>
    %cst_73 = arith.constant 0.000000e+00 : f32
    %159 = vector.broadcast %cst_73 : f32 to vector<16x32xf32>
    %160 = vector.extract_strided_slice %156 {offsets = [0, 0, 0], sizes = [2, 8, 8], strides = [1, 1, 1]} : vector<2x8x32xf32> to vector<2x8x8xf32>
    %161 = vector.extract_strided_slice %157 {offsets = [0, 0, 0], sizes = [2, 16, 8], strides = [1, 1, 1]} : vector<2x16x32xf32> to vector<2x16x8xf32>
    "tpu.trace_start"() <{level = 10 : i32, message = "btd,bsd->bts"}> : () -> ()
    %cst_74 = arith.constant dense<0.000000e+00> : vector<2x8x16xf32>
    %162 = tpu.matmul %160, %161, %cst_74 {dimension_numbers = #tpu.dot_dimension_numbers<[2], [2], [1], [1], [0, 0, 0, 1, 1, 1], [0], [0]>} : vector<2x8x8xf32>, vector<2x16x8xf32>, vector<2x8x16xf32> -> vector<2x8x16xf32>
    "tpu.trace_stop"() : () -> ()
    %163 = vector.broadcast %154 : vector<2x1x16xf32> to vector<2x8x16xf32>
    %164 = arith.addf %162, %163 : vector<2x8x16xf32>
    %cst_75 = arith.constant dense<0xFF800000> : vector<2x8xf32>
    %165 = vector.multi_reduction <maximumf>, %164, %cst_75 [2] : vector<2x8x16xf32> to vector<2x8xf32>
    %166 = vector.shape_cast %165 : vector<2x8xf32> to vector<2x8x1xf32>
    %167 = vector.broadcast %166 : vector<2x8x1xf32> to vector<2x8x16xf32>
    %168 = arith.subf %164, %167 : vector<2x8x16xf32>
    %169 = math.exp %168 : vector<2x8x16xf32>
    %cst_76 = arith.constant dense<0.000000e+00> : vector<2x8xf32>
    %170 = vector.multi_reduction <add>, %169, %cst_76 [2] : vector<2x8x16xf32> to vector<2x8xf32>
    %171 = vector.shape_cast %170 : vector<2x8xf32> to vector<2x8x1xf32>
    %172 = tpu.reciprocal %171 {approx = true} : vector<2x8x1xf32> -> vector<2x8x1xf32>
    %173 = vector.broadcast %172 : vector<2x8x1xf32> to vector<2x8x16xf32>
    %174 = arith.mulf %169, %173 : vector<2x8x16xf32>
    %175 = vector.extract_strided_slice %158 {offsets = [0, 0, 0], sizes = [2, 16, 8], strides = [1, 1, 1]} : vector<2x16x32xf32> to vector<2x16x8xf32>
    "tpu.trace_start"() <{level = 10 : i32, message = "bts,bsd->btd"}> : () -> ()
    %cst_77 = arith.constant dense<0.000000e+00> : vector<2x8x8xf32>
    %176 = tpu.matmul %174, %175, %cst_77 {dimension_numbers = #tpu.dot_dimension_numbers<[2], [1], [1], [2], [0, 0, 0, 1, 1, 2], [0], [0]>} : vector<2x8x16xf32>, vector<2x16x8xf32>, vector<2x8x8xf32> -> vector<2x8x8xf32>
    "tpu.trace_stop"() : () -> ()
    %177 = vector.shape_cast %176 : vector<2x8x8xf32> to vector<16x8xf32>
    %178 = vector.extract_strided_slice %155 {offsets = [0, 0], sizes = [8, 32], strides = [1, 1]} : vector<32x32xf32> to vector<8x32xf32>
    %cst_78 = arith.constant dense<0.000000e+00> : vector<16x32xf32>
    %179 = tpu.matmul %177, %178, %cst_78 {dimension_numbers = #tpu.dot_dimension_numbers<[1], [0], [0], [1], [0, 0, 1, 1], [], []>} : vector<16x8xf32>, vector<8x32xf32>, vector<16x32xf32> -> vector<16x32xf32>
    %180 = arith.addf %159, %179 : vector<16x32xf32>
    %181 = vector.extract_strided_slice %156 {offsets = [0, 0, 8], sizes = [2, 8, 8], strides = [1, 1, 1]} : vector<2x8x32xf32> to vector<2x8x8xf32>
    %182 = vector.extract_strided_slice %157 {offsets = [0, 0, 8], sizes = [2, 16, 8], strides = [1, 1, 1]} : vector<2x16x32xf32> to vector<2x16x8xf32>
    "tpu.trace_start"() <{level = 10 : i32, message = "btd,bsd->bts"}> : () -> ()
    %cst_79 = arith.constant dense<0.000000e+00> : vector<2x8x16xf32>
    %183 = tpu.matmul %181, %182, %cst_79 {dimension_numbers = #tpu.dot_dimension_numbers<[2], [2], [1], [1], [0, 0, 0, 1, 1, 1], [0], [0]>} : vector<2x8x8xf32>, vector<2x16x8xf32>, vector<2x8x16xf32> -> vector<2x8x16xf32>
    "tpu.trace_stop"() : () -> ()
    %184 = vector.broadcast %154 : vector<2x1x16xf32> to vector<2x8x16xf32>
    %185 = arith.addf %183, %184 : vector<2x8x16xf32>
    %cst_80 = arith.constant dense<0xFF800000> : vector<2x8xf32>
    %186 = vector.multi_reduction <maximumf>, %185, %cst_80 [2] : vector<2x8x16xf32> to vector<2x8xf32>
    %187 = vector.shape_cast %186 : vector<2x8xf32> to vector<2x8x1xf32>
    %188 = vector.broadcast %187 : vector<2x8x1xf32> to vector<2x8x16xf32>
    %189 = arith.subf %185, %188 : vector<2x8x16xf32>
    %190 = math.exp %189 : vector<2x8x16xf32>
    %cst_81 = arith.constant dense<0.000000e+00> : vector<2x8xf32>
    %191 = vector.multi_reduction <add>, %190, %cst_81 [2] : vector<2x8x16xf32> to vector<2x8xf32>
    %192 = vector.shape_cast %191 : vector<2x8xf32> to vector<2x8x1xf32>
    %193 = tpu.reciprocal %192 {approx = true} : vector<2x8x1xf32> -> vector<2x8x1xf32>
    %194 = vector.broadcast %193 : vector<2x8x1xf32> to vector<2x8x16xf32>
    %195 = arith.mulf %190, %194 : vector<2x8x16xf32>
    %196 = vector.extract_strided_slice %158 {offsets = [0, 0, 8], sizes = [2, 16, 8], strides = [1, 1, 1]} : vector<2x16x32xf32> to vector<2x16x8xf32>
    "tpu.trace_start"() <{level = 10 : i32, message = "bts,bsd->btd"}> : () -> ()
    %cst_82 = arith.constant dense<0.000000e+00> : vector<2x8x8xf32>
    %197 = tpu.matmul %195, %196, %cst_82 {dimension_numbers = #tpu.dot_dimension_numbers<[2], [1], [1], [2], [0, 0, 0, 1, 1, 2], [0], [0]>} : vector<2x8x16xf32>, vector<2x16x8xf32>, vector<2x8x8xf32> -> vector<2x8x8xf32>
    "tpu.trace_stop"() : () -> ()
    %198 = vector.shape_cast %197 : vector<2x8x8xf32> to vector<16x8xf32>
    %199 = vector.extract_strided_slice %155 {offsets = [8, 0], sizes = [8, 32], strides = [1, 1]} : vector<32x32xf32> to vector<8x32xf32>
    %cst_83 = arith.constant dense<0.000000e+00> : vector<16x32xf32>
    %200 = tpu.matmul %198, %199, %cst_83 {dimension_numbers = #tpu.dot_dimension_numbers<[1], [0], [0], [1], [0, 0, 1, 1], [], []>} : vector<16x8xf32>, vector<8x32xf32>, vector<16x32xf32> -> vector<16x32xf32>
    %201 = arith.addf %180, %200 : vector<16x32xf32>
    %202 = vector.extract_strided_slice %156 {offsets = [0, 0, 16], sizes = [2, 8, 8], strides = [1, 1, 1]} : vector<2x8x32xf32> to vector<2x8x8xf32>
    %203 = vector.extract_strided_slice %157 {offsets = [0, 0, 16], sizes = [2, 16, 8], strides = [1, 1, 1]} : vector<2x16x32xf32> to vector<2x16x8xf32>
    "tpu.trace_start"() <{level = 10 : i32, message = "btd,bsd->bts"}> : () -> ()
    %cst_84 = arith.constant dense<0.000000e+00> : vector<2x8x16xf32>
    %204 = tpu.matmul %202, %203, %cst_84 {dimension_numbers = #tpu.dot_dimension_numbers<[2], [2], [1], [1], [0, 0, 0, 1, 1, 1], [0], [0]>} : vector<2x8x8xf32>, vector<2x16x8xf32>, vector<2x8x16xf32> -> vector<2x8x16xf32>
    "tpu.trace_stop"() : () -> ()
    %205 = vector.broadcast %154 : vector<2x1x16xf32> to vector<2x8x16xf32>
    %206 = arith.addf %204, %205 : vector<2x8x16xf32>
    %cst_85 = arith.constant dense<0xFF800000> : vector<2x8xf32>
    %207 = vector.multi_reduction <maximumf>, %206, %cst_85 [2] : vector<2x8x16xf32> to vector<2x8xf32>
    %208 = vector.shape_cast %207 : vector<2x8xf32> to vector<2x8x1xf32>
    %209 = vector.broadcast %208 : vector<2x8x1xf32> to vector<2x8x16xf32>
    %210 = arith.subf %206, %209 : vector<2x8x16xf32>
    %211 = math.exp %210 : vector<2x8x16xf32>
    %cst_86 = arith.constant dense<0.000000e+00> : vector<2x8xf32>
    %212 = vector.multi_reduction <add>, %211, %cst_86 [2] : vector<2x8x16xf32> to vector<2x8xf32>
    %213 = vector.shape_cast %212 : vector<2x8xf32> to vector<2x8x1xf32>
    %214 = tpu.reciprocal %213 {approx = true} : vector<2x8x1xf32> -> vector<2x8x1xf32>
    %215 = vector.broadcast %214 : vector<2x8x1xf32> to vector<2x8x16xf32>
    %216 = arith.mulf %211, %215 : vector<2x8x16xf32>
    %217 = vector.extract_strided_slice %158 {offsets = [0, 0, 16], sizes = [2, 16, 8], strides = [1, 1, 1]} : vector<2x16x32xf32> to vector<2x16x8xf32>
    "tpu.trace_start"() <{level = 10 : i32, message = "bts,bsd->btd"}> : () -> ()
    %cst_87 = arith.constant dense<0.000000e+00> : vector<2x8x8xf32>
    %218 = tpu.matmul %216, %217, %cst_87 {dimension_numbers = #tpu.dot_dimension_numbers<[2], [1], [1], [2], [0, 0, 0, 1, 1, 2], [0], [0]>} : vector<2x8x16xf32>, vector<2x16x8xf32>, vector<2x8x8xf32> -> vector<2x8x8xf32>
    "tpu.trace_stop"() : () -> ()
    %219 = vector.shape_cast %218 : vector<2x8x8xf32> to vector<16x8xf32>
    %220 = vector.extract_strided_slice %155 {offsets = [16, 0], sizes = [8, 32], strides = [1, 1]} : vector<32x32xf32> to vector<8x32xf32>
    %cst_88 = arith.constant dense<0.000000e+00> : vector<16x32xf32>
    %221 = tpu.matmul %219, %220, %cst_88 {dimension_numbers = #tpu.dot_dimension_numbers<[1], [0], [0], [1], [0, 0, 1, 1], [], []>} : vector<16x8xf32>, vector<8x32xf32>, vector<16x32xf32> -> vector<16x32xf32>
    %222 = arith.addf %201, %221 : vector<16x32xf32>
    %223 = vector.extract_strided_slice %156 {offsets = [0, 0, 24], sizes = [2, 8, 8], strides = [1, 1, 1]} : vector<2x8x32xf32> to vector<2x8x8xf32>
    %224 = vector.extract_strided_slice %157 {offsets = [0, 0, 24], sizes = [2, 16, 8], strides = [1, 1, 1]} : vector<2x16x32xf32> to vector<2x16x8xf32>
    "tpu.trace_start"() <{level = 10 : i32, message = "btd,bsd->bts"}> : () -> ()
    %cst_89 = arith.constant dense<0.000000e+00> : vector<2x8x16xf32>
    %225 = tpu.matmul %223, %224, %cst_89 {dimension_numbers = #tpu.dot_dimension_numbers<[2], [2], [1], [1], [0, 0, 0, 1, 1, 1], [0], [0]>} : vector<2x8x8xf32>, vector<2x16x8xf32>, vector<2x8x16xf32> -> vector<2x8x16xf32>
    "tpu.trace_stop"() : () -> ()
    %226 = vector.broadcast %154 : vector<2x1x16xf32> to vector<2x8x16xf32>
    %227 = arith.addf %225, %226 : vector<2x8x16xf32>
    %cst_90 = arith.constant dense<0xFF800000> : vector<2x8xf32>
    %228 = vector.multi_reduction <maximumf>, %227, %cst_90 [2] : vector<2x8x16xf32> to vector<2x8xf32>
    %229 = vector.shape_cast %228 : vector<2x8xf32> to vector<2x8x1xf32>
    %230 = vector.broadcast %229 : vector<2x8x1xf32> to vector<2x8x16xf32>
    %231 = arith.subf %227, %230 : vector<2x8x16xf32>
    %232 = math.exp %231 : vector<2x8x16xf32>
    %cst_91 = arith.constant dense<0.000000e+00> : vector<2x8xf32>
    %233 = vector.multi_reduction <add>, %232, %cst_91 [2] : vector<2x8x16xf32> to vector<2x8xf32>
    %234 = vector.shape_cast %233 : vector<2x8xf32> to vector<2x8x1xf32>
    %235 = tpu.reciprocal %234 {approx = true} : vector<2x8x1xf32> -> vector<2x8x1xf32>
    %236 = vector.broadcast %235 : vector<2x8x1xf32> to vector<2x8x16xf32>
    %237 = arith.mulf %232, %236 : vector<2x8x16xf32>
    %238 = vector.extract_strided_slice %158 {offsets = [0, 0, 24], sizes = [2, 16, 8], strides = [1, 1, 1]} : vector<2x16x32xf32> to vector<2x16x8xf32>
    "tpu.trace_start"() <{level = 10 : i32, message = "bts,bsd->btd"}> : () -> ()
    %cst_92 = arith.constant dense<0.000000e+00> : vector<2x8x8xf32>
    %239 = tpu.matmul %237, %238, %cst_92 {dimension_numbers = #tpu.dot_dimension_numbers<[2], [1], [1], [2], [0, 0, 0, 1, 1, 2], [0], [0]>} : vector<2x8x16xf32>, vector<2x16x8xf32>, vector<2x8x8xf32> -> vector<2x8x8xf32>
    "tpu.trace_stop"() : () -> ()
    %240 = vector.shape_cast %239 : vector<2x8x8xf32> to vector<16x8xf32>
    %241 = vector.extract_strided_slice %155 {offsets = [24, 0], sizes = [8, 32], strides = [1, 1]} : vector<32x32xf32> to vector<8x32xf32>
    %cst_93 = arith.constant dense<0.000000e+00> : vector<16x32xf32>
    %242 = tpu.matmul %240, %241, %cst_93 {dimension_numbers = #tpu.dot_dimension_numbers<[1], [0], [0], [1], [0, 0, 1, 1], [], []>} : vector<16x8xf32>, vector<8x32xf32>, vector<16x32xf32> -> vector<16x32xf32>
    %243 = arith.addf %222, %242 : vector<16x32xf32>
    %c0_94 = arith.constant 0 : index
    %c0_95 = arith.constant 0 : index
    %244 = vector.load %arg16[%c0_94, %c0_95] : memref<1x32xf32, #tpu.memory_space<vmem>>, vector<1x32xf32>
    %245 = vector.broadcast %244 : vector<1x32xf32> to vector<16x32xf32>
    %246 = arith.addf %243, %245 : vector<16x32xf32>
    %247 = arith.addf %134, %246 : vector<16x32xf32>
    %c0_96 = arith.constant 0 : index
    %c0_97 = arith.constant 0 : index
    %248 = vector.load %arg23[%c0_96, %c0_97] : memref<1x32xf32, #tpu.memory_space<vmem>>, vector<1x32xf32>
    %c0_98 = arith.constant 0 : index
    %c0_99 = arith.constant 0 : index
    %249 = vector.load %arg24[%c0_98, %c0_99] : memref<1x32xf32, #tpu.memory_space<vmem>>, vector<1x32xf32>
    %cst_100 = arith.constant dense<0.000000e+00> : vector<16xf32>
    %250 = vector.multi_reduction <add>, %247, %cst_100 [1] : vector<16x32xf32> to vector<16xf32>
    %251 = vector.shape_cast %250 : vector<16xf32> to vector<16x1xf32>
    %cst_101 = arith.constant 3.200000e+01 : f32
    %252 = vector.broadcast %cst_101 : f32 to vector<16x1xf32>
    %253 = arith.divf %251, %252 : vector<16x1xf32>
    %254 = vector.broadcast %253 : vector<16x1xf32> to vector<16x32xf32>
    %255 = arith.subf %247, %254 : vector<16x32xf32>
    %256 = arith.mulf %255, %255 : vector<16x32xf32>
    %cst_102 = arith.constant dense<0.000000e+00> : vector<16xf32>
    %257 = vector.multi_reduction <add>, %256, %cst_102 [1] : vector<16x32xf32> to vector<16xf32>
    %258 = vector.shape_cast %257 : vector<16xf32> to vector<16x1xf32>
    %cst_103 = arith.constant 3.200000e+01 : f32
    %259 = vector.broadcast %cst_103 : f32 to vector<16x1xf32>
    %260 = arith.divf %258, %259 : vector<16x1xf32>
    %261 = vector.broadcast %253 : vector<16x1xf32> to vector<16x32xf32>
    %262 = arith.subf %247, %261 : vector<16x32xf32>
    %cst_104 = arith.constant 9.99999974E-6 : f32
    %263 = vector.broadcast %cst_104 : f32 to vector<16x1xf32>
    %264 = arith.addf %260, %263 : vector<16x1xf32>
    %265 = math.rsqrt %264 : vector<16x1xf32>
    %266 = vector.broadcast %265 : vector<16x1xf32> to vector<16x32xf32>
    %267 = arith.mulf %262, %266 : vector<16x32xf32>
    %268 = vector.broadcast %248 : vector<1x32xf32> to vector<16x32xf32>
    %269 = arith.mulf %267, %268 : vector<16x32xf32>
    %270 = vector.broadcast %249 : vector<1x32xf32> to vector<16x32xf32>
    %271 = arith.addf %269, %270 : vector<16x32xf32>
    %c0_105 = arith.constant 0 : index
    %c0_106 = arith.constant 0 : index
    %272 = vector.load %arg17[%c0_105, %c0_106] : memref<32x64xf32, #tpu.memory_space<vmem>>, vector<32x64xf32>
    %cst_107 = arith.constant dense<0.000000e+00> : vector<16x64xf32>
    %273 = tpu.matmul %271, %272, %cst_107 {dimension_numbers = #tpu.dot_dimension_numbers<[1], [0], [0], [1], [0, 0, 1, 1], [], []>} : vector<16x32xf32>, vector<32x64xf32>, vector<16x64xf32> -> vector<16x64xf32>
    %c0_108 = arith.constant 0 : index
    %c0_109 = arith.constant 0 : index
    %274 = vector.load %arg18[%c0_108, %c0_109] : memref<1x64xf32, #tpu.memory_space<vmem>>, vector<1x64xf32>
    %275 = vector.broadcast %274 : vector<1x64xf32> to vector<16x64xf32>
    %276 = arith.addf %273, %275 : vector<16x64xf32>
    %cst_110 = arith.constant 0.000000e+00 : f32
    %277 = vector.broadcast %cst_110 : f32 to vector<16x64xf32>
    %278 = arith.maximumf %276, %277 : vector<16x64xf32>
    %c0_111 = arith.constant 0 : index
    %c0_112 = arith.constant 0 : index
    %279 = vector.load %arg19[%c0_111, %c0_112] : memref<64x32xf32, #tpu.memory_space<vmem>>, vector<64x32xf32>
    %cst_113 = arith.constant dense<0.000000e+00> : vector<16x32xf32>
    %280 = tpu.matmul %278, %279, %cst_113 {dimension_numbers = #tpu.dot_dimension_numbers<[1], [0], [0], [1], [0, 0, 1, 1], [], []>} : vector<16x64xf32>, vector<64x32xf32>, vector<16x32xf32> -> vector<16x32xf32>
    %c0_114 = arith.constant 0 : index
    %c0_115 = arith.constant 0 : index
    %281 = vector.load %arg20[%c0_114, %c0_115] : memref<1x32xf32, #tpu.memory_space<vmem>>, vector<1x32xf32>
    %282 = vector.broadcast %281 : vector<1x32xf32> to vector<16x32xf32>
    %283 = arith.addf %280, %282 : vector<16x32xf32>
    %284 = arith.addf %271, %283 : vector<16x32xf32>
    %c0_116 = arith.constant 0 : index
    %c0_117 = arith.constant 0 : index
    %285 = vector.load %arg25[%c0_116, %c0_117] : memref<1x32xf32, #tpu.memory_space<vmem>>, vector<1x32xf32>
    %c0_118 = arith.constant 0 : index
    %c0_119 = arith.constant 0 : index
    %286 = vector.load %arg26[%c0_118, %c0_119] : memref<1x32xf32, #tpu.memory_space<vmem>>, vector<1x32xf32>
    %cst_120 = arith.constant dense<0.000000e+00> : vector<16xf32>
    %287 = vector.multi_reduction <add>, %284, %cst_120 [1] : vector<16x32xf32> to vector<16xf32>
    %288 = vector.shape_cast %287 : vector<16xf32> to vector<16x1xf32>
    %cst_121 = arith.constant 3.200000e+01 : f32
    %289 = vector.broadcast %cst_121 : f32 to vector<16x1xf32>
    %290 = arith.divf %288, %289 : vector<16x1xf32>
    %291 = vector.broadcast %290 : vector<16x1xf32> to vector<16x32xf32>
    %292 = arith.subf %284, %291 : vector<16x32xf32>
    %293 = arith.mulf %292, %292 : vector<16x32xf32>
    %cst_122 = arith.constant dense<0.000000e+00> : vector<16xf32>
    %294 = vector.multi_reduction <add>, %293, %cst_122 [1] : vector<16x32xf32> to vector<16xf32>
    %295 = vector.shape_cast %294 : vector<16xf32> to vector<16x1xf32>
    %cst_123 = arith.constant 3.200000e+01 : f32
    %296 = vector.broadcast %cst_123 : f32 to vector<16x1xf32>
    %297 = arith.divf %295, %296 : vector<16x1xf32>
    %298 = vector.broadcast %290 : vector<16x1xf32> to vector<16x32xf32>
    %299 = arith.subf %284, %298 : vector<16x32xf32>
    %cst_124 = arith.constant 9.99999974E-6 : f32
    %300 = vector.broadcast %cst_124 : f32 to vector<16x1xf32>
    %301 = arith.addf %297, %300 : vector<16x1xf32>
    %302 = math.rsqrt %301 : vector<16x1xf32>
    %303 = vector.broadcast %302 : vector<16x1xf32> to vector<16x32xf32>
    %304 = arith.mulf %299, %303 : vector<16x32xf32>
    %305 = vector.broadcast %285 : vector<1x32xf32> to vector<16x32xf32>
    %306 = arith.mulf %304, %305 : vector<16x32xf32>
    %307 = vector.broadcast %286 : vector<1x32xf32> to vector<16x32xf32>
    %308 = arith.addf %306, %307 : vector<16x32xf32>
    %c0_125 = arith.constant 0 : index
    %c0_126 = arith.constant 0 : index
    %309 = vector.load %arg27[%c0_125, %c0_126] : memref<16x32xf32, #tpu.memory_space<vmem>>, vector<16x32xf32>
    tpu.vector_store %arg27[%c0_125, %c0_126], %308 {strides = array<i32>} : memref<16x32xf32, #tpu.memory_space<vmem>>, vector<16x32xf32>,
    return
  }
}

</mosaic_0001>

<bundles_post_ra>
// kernel: decoder_layer_forward.1
= control target key start
LH: loop header
LB: loop body
LE: loop exit
PB: predicated region body
PF: predicated region fallthrough
CT: control target
= control target key end

     0   :  { %vm101_vm0 = vcmask 261120   ;;  %v5071_v8 = vmov 0.0   ;;  %vm5072_vm1 = vmmov 0   ;;  %s5074_s30 = smov 64   ;;  %vm209_vm2 = vcmask 64512   ;;  %s5082_s29 = smov 104   ;;  %s5821_s5 = inlined_call_operand.vmem [shape: f32[32,96], index: 5, kind: input, shape index: {}]   ;;  %s5822_s0 = inlined_call_operand.vmem [shape: f32[16,32], index: 0, kind: input, shape index: {}]   ;;  %s5823_s6 = inlined_call_operand.vmem [shape: f32[1,96], index: 6, kind: input, shape index: {}]   ;;  %s5824_s28 = inlined_call_operand.vmem [shape: f32[2,16,32], index: 28, kind: output, shape index: {1}]   ;;  %s5825_s3 = inlined_call_operand.vmem [shape: f32[1,8,8], index: 3, kind: input, shape index: {}]   ;;  %s5826_s7 = inlined_call_operand.vmem [shape: f32[32,32], index: 7, kind: input, shape index: {}]   ;;  %s5827_s8 = inlined_call_operand.vmem [shape: f32[1,32], index: 8, kind: input, shape index: {}]   ;;  %s5828_s11 = inlined_call_operand.vmem [shape: f32[32,32], index: 11, kind: input, shape index: {}]   ;;  %s5829_s1 = inlined_call_operand.vmem [shape: f32[32,32], index: 1, kind: input, shape index: {}]   ;;  %s5830_s9 = inlined_call_operand.vmem [shape: f32[32,32], index: 9, kind: input, shape index: {}]   ;;  %s5831_s13 = inlined_call_operand.vmem [shape: f32[32,32], index: 13, kind: input, shape index: {}]   ;;  %s5832_s21 = inlined_call_operand.vmem [shape: f32[1,32], index: 21, kind: input, shape index: {}]   ;;  %s5833_s22 = inlined_call_operand.vmem [shape: f32[1,32], index: 22, kind: input, shape index: {}]   ;;  %s5834_s2 = inlined_call_operand.vmem [shape: f32[32,32], index: 2, kind: input, shape index: {}]   ;;  %s5835_s12 = inlined_call_operand.vmem [shape: f32[1,32], index: 12, kind: input, shape index: {}]   ;;  %s5836_s10 = inlined_call_operand.vmem [shape: f32[1,32], index: 10, kind: input, shape index: {}]   ;;  %s5837_s14 = inlined_call_operand.vmem [shape: f32[1,32], index: 14, kind: input, shape index: {}]   ;;  %s5838_s4 = inlined_call_operand.vmem [shape: f32[2,1,16], index: 4, kind: input, shape index: {}]   ;;  %s5839_s15 = inlined_call_operand.vmem [shape: f32[32,32], index: 15, kind: input, shape index: {}]   ;;  %s5840_s16 = inlined_call_operand.vmem [shape: f32[1,32], index: 16, kind: input, shape index: {}]   ;;  %s5841_s17 = inlined_call_operand.vmem [shape: f32[32,64], index: 17, kind: input, shape index: {}]   ;;  %s5842_s19 = inlined_call_operand.vmem [shape: f32[64,32], index: 19, kind: input, shape index: {}]   ;;  %s5843_s23 = inlined_call_operand.vmem [shape: f32[1,32], index: 23, kind: input, shape index: {}]   ;;  %s5844_s24 = inlined_call_operand.vmem [shape: f32[1,32], index: 24, kind: input, shape index: {}]   ;;  %s5845_s18 = inlined_call_operand.vmem [shape: f32[1,64], index: 18, kind: input, shape index: {}]   ;;  %s5846_s20 = inlined_call_operand.vmem [shape: f32[1,32], index: 20, kind: input, shape index: {}]   ;;  %s5847_s25 = inlined_call_operand.vmem [shape: f32[1,32], index: 25, kind: input, shape index: {}]   ;;  %s5848_s26 = inlined_call_operand.vmem [shape: f32[1,32], index: 26, kind: input, shape index: {}]   ;;  %s5849_s27 = inlined_call_operand.vmem [shape: f32[16,32], index: 27, kind: output, shape index: {0}]  }
   0x1   :  { %5858 = sst [smem:[#allocation2_spill]] %s5821_s5  ;;  %4506 = vmatprep.subr.mxu0 %v5071_v8  ;;  %4508 = vmatprep.mubr.msk.f32.mxu0 %vm5072_vm1, %v5071_v8  ;;  %vm5540_vm3 = vmpackc.low %vm209_vm2, %vm209_vm2  ;;  %vm2396_vm4 = vcmask 130048   ;;  %vm4093_vm5 = vcmask 523264  }
   0x2   :  { %5859 = sst [smem:[#allocation3_spill]] %s5822_s0 }
   0x3   :  { %5860 = sst [smem:[#allocation4_spill]] %s5823_s6 }
   0x4   :  { %5861 = sst [smem:[#allocation5_spill]] %s5824_s28  ;;  %s5079_s28 = smov 112  }
   0x5   :  { %5862 = sst [smem:[#allocation6_spill]] %s5825_s3  ;;  %s5874_s0 = sld [smem:[#allocation5_spill]] }
   0x6   :  { %5863 = sst [smem:[#allocation7_spill]] %s5826_s7  ;;  %s5873_s7 = sld [smem:[#allocation4_spill]] }
   0x7   :  { %5864 = sst [smem:[#allocation8_spill]] %s5827_s8  ;;  %s5875_s5 = sld [smem:[#allocation6_spill]] }
   0x8   :  { %5865 = sst [smem:[#allocation9_spill]] %s5828_s11  ;;  %s5872_s11 = sld [smem:[#allocation3_spill]] }
   0x9   :  { %5866 = sst [smem:[#allocation10_spill]] %s5829_s1  ;;  %s5078_s8 = smov 56  }
   0xa   :  { %5867 = sst [smem:[#allocation11_spill]] %s5830_s9  ;;  %s5871_s9 = sld [smem:[#allocation2_spill]] }
   0xb   :  { %5868 = sst [smem:[#allocation12_spill]] %s5831_s13  ;;  %s5075_s13 = smov 120  }
   0xc   :  { %5869 = sst [smem:[#allocation13_spill]] %s5832_s21  ;;  %v4231_v9 = vld [vmem:[%s5873_s7] ss:$0 sm:$0xff]  ;;  %s5081_s21 = smov 72  }
   0xd   :  { %5870 = sst [smem:[#allocation14_spill]] %s5833_s22  ;;  %v5309_v19 = vld [vmem:[%s5875_s5] sm:$0xff]  ;;  %s5876_s22 = sld [smem:[#allocation7_spill]] }
   0xe   :  { %v5245_v5 = vld [vmem:[%s5872_s11] sm:$0xff]  ;;  %v5252_v7 = vld [vmem:[%s5872_s11 + $0x8] sm:$0xff]  ;;  %s5877_s3 = sld [smem:[#allocation8_spill]]  ;;  %s5878_s1 = sld [smem:[#allocation9_spill]] }
   0xf   :  { %4493 = vmatprep.mubr.msk.f32.mxu1 %vm101_vm0, %v5245_v5  ;;  %s5880_s7 = sld [smem:[#allocation11_spill]]  ;;  %s5883_s5 = sld [smem:[#allocation14_spill]] }
  0x10   :  { %v90_v0 = vld [vmem:[%s5871_s9] sm:$0xff]  ;;  %v91_v1 = vld [vmem:[%s5871_s9 + $0x8] sm:$0xff]  ;;  %v92_v2 = vld [vmem:[%s5871_s9 + $0x10] sm:$0xff] }
  0x11   :  { %v4797_v3 = vpack.c.bf16 %v91_v1, %v90_v0  ;;  %v93_v4 = vld [vmem:[%s5871_s9 + $0x18] sm:$0xff]  ;;  %s5073_s9 = smov 96  }
  0x12   :  { %v4801_v6 = vpack.c.bf16 %v93_v4, %v92_v2 }
  0x13   :  { %4798 = vmatprep.subr.bf16.mxu1 %v4797_v3 }
  0x14   :  { %4800 = vmatpush3.bf16.msra.mxu1 %v4797_v3 }
  0x15   :  { %4802 = vmatprep.subr.bf16.mxu1 %v4801_v6 }
  0x18   :  { %4804 = vmatpush3.bf16.msra.mxu1 %v4801_v6 }
  0x19   :  { %4496 = vmatprep.subr.mxu1 %v5071_v8 }
  0x1b   :  { %4494 = vmatmul.mubr.msk.f32.vlgmr.msra.gmra.mrb[0].mxu1 %vm101_vm0, %v5252_v7 }
  0x1c   :  { %4498 = vmatprep.mubr.msk.f32.mxu1 %vm5072_vm1, %v5071_v8 }
  0xee   :  { %v4495_v10 = vpop.f32.mrb[0].mxu1 }
  0xef   :  { %v174_v11 = vpop.f32.mrb[1].mxu1  ;;  %v5268_v13 = vadd.f32 %v4495_v10, %v4231_v9 }
  0xf0   :  { %v5265_v12 = vadd.f32 %v4231_v9, %v174_v11 }
  0xf1   :  { %v5274_v14 = vmul.f32 0.35355338, %v5268_v13 }
  0xf2   :  { %187 = vrot.lane.b32.xlu0 %v5265_v12, %s5073_s9  ;;  %v5285_v16 = vmul.f32 0.35355338, %v5265_v12 }
  0xf6   :  { %189 = vrot.lane.b32.xlu0 %v5268_v13, %s5073_s9  ;;  %s5076_s9 = smov 88  }
  0xfa   :  { %197 = vrot.lane.b32.xlu0 %v5268_v13, %s5074_s30 }
  0xfe   :  { %606 = vrot.lane.b32.xlu0 %v5274_v14, %s5075_s13 }
 0x164   :  { %v188_v15 = vpop.permute.xlu0 %187 }
 0x165   :  { %193 = vst.msk [vmem:[%s5874_s0] sm:$0xff] %vm101_vm0, %v188_v15  ;;  %4497 = vmatpush3.xpose.msk.msra.mxu1 %vm209_vm2, %v188_v15 }
 0x166   :  { %4501 = vmatprep.subr.mxu1 %v5071_v8 }
 0x168   :  { %v190_v17 = vpop.permute.xlu0 %189  ;;  %4499 = vmatmul.mubr.msk.f32.vlgmr.msra.gmra.mrb[2].mxu1 %vm209_vm2, %v5285_v16 }
 0x169   :  { %194 = vst.msk [vmem:[%s5874_s0 + $0x8] sm:$0xff] %vm101_vm0, %v190_v17  ;;  %4502 = vmatpush3.xpose.msk.msra.mxu1 %vm209_vm2, %v190_v17  ;;  %4503 = vmatprep.mubr.msk.f32.mxu1 %vm5072_vm1, %v5071_v8 }
 0x16a   :  { %4511 = vmatprep.subr.mxu1 %v5071_v8 }
 0x16c   :  { %v198_v18 = vpop.permute.xlu0 %197  ;;  %4504 = vmatmul.mubr.msk.f32.vlgmr.msra.gmra.mrb[4].mxu1 %vm209_vm2, %v5274_v14 }
 0x16d   :  { %4235 = vst.msk [vmem:[%s5874_s0 + $0x18] sm:$0xff] %vm101_vm0, %v198_v18  ;;  %4512 = vmatpush3.msra.mxu1 %v198_v18  ;;  %4513 = vmatprep.mubr.msk.f32.mxu1 %vm5072_vm1, %v5071_v8 }
 0x16e   :  { %4521 = vmatprep.subr.mxu1 %v5071_v8 }
 0x170   :  { %v607_v28 = vpop.permute.xlu0 %606 }
 0x23b   :  { %v281_v20 = vpop.f32.mrb[2].mxu1 }
 0x23c   :  { %v282_v21 = vadd.f32 %v281_v20, %v5309_v19  ;;  %v4500_v22 = vpop.f32.mrb[3].mxu1 }
 0x23e   :  { %v360_v23 = vsel %vm209_vm2, %v282_v21, -inf }
 0x23f   :  { %361 = vmax.xlane.f32.xlu0 %v360_v23  ;;  %v356_v24 = vpop.f32.mrb[4].mxu1 }
 0x240   :  { %v357_v25 = vadd.f32 %v356_v24, %v5309_v19  ;;  %v4505_v26 = vpop.f32.mrb[5].mxu1 }
 0x241   :  { %v205_v26 = vld [vmem:[%s5876_s22] sm:$0xff] }
 0x242   :  { %v363_v27 = vsel %vm209_vm2, %v357_v25, -inf }
 0x243   :  { %364 = vmax.xlane.f32.xlu1 %v363_v27 }
 0x255   :  { %195 = vrot.lane.b32.xlu0 %v5265_v12, %s5074_s30  ;;  %s5077_s30 = smov 80  }
 0x259   :  { %528 = vrot.lane.b32.xlu0 %v5285_v16, %s5075_s13 }
 0x2cc   :  { %v362_v29 = vpop.xlane.xlu0 %361 }
 0x2cd   :  { %v366_v36 = vsub.f32 %v282_v21, %v362_v29 }
 0x2cf   :  { %v368_v37 = vmul.f32 1.442695, %v366_v36 }
 0x2d0   :  { %v196_v30 = vpop.permute.xlu0 %195  ;;  %v365_v31 = vpop.xlane.xlu1 %364 }
 0x2d1   :  { %4234 = vst.msk [vmem:[%s5874_s0 + $0x10] sm:$0xff] %vm101_vm0, %v196_v30  ;;  %v367_v32 = vsub.f32 %v357_v25, %v365_v31  ;;  %4507 = vmatpush3.msra.mxu0 %v196_v30  ;;  %s5080_s0 = smov 48   ;;  %v206_v25 = vld [vmem:[%s5876_s22 + $0x8] sm:$0xff] }
 0x2d2   :  { %4516 = vmatprep.subr.mxu0 %v5071_v8 }
 0x2d3   :  { %v370_v33 = vmul.f32 1.442695, %v367_v32 }
 0x2d4   :  { %v529_v48 = vpop.permute.xlu0 %528 }
 0x2d5   :  { %4995 = vpow2.f32 %v370_v33 }
 0x2d6   :  { %4997 = vpow2.f32 %v368_v37 }
 0x2df   :  { %v4996_v34 = vpop.eup %4995 }
 0x2e0   :  { %v375_v35 = vsel %vm209_vm2, %v4996_v34, 0.0  ;;  %v4998_v38 = vpop.eup %4997 }
 0x2e1   :  { %376 = vadd.xlane.f32.xlu1 %v375_v35  ;;  %v372_v39 = vsel %vm209_vm2, %v4998_v38, 0.0 }
 0x2f2   :  { %608 = vrot.lane.b32.xlu1 %v5268_v13, %s5076_s9 }
 0x316   :  { %373 = vadd.xlane.f32.xlu1 %v372_v39 }
 0x327   :  { %530 = vrot.lane.b32.xlu1 %v5265_v12, %s5076_s9  ;;  %s5083_s9 = smov 40  }
 0x32b   :  { %1022 = vrot.lane.b32.xlu1 %v5265_v12, %s5077_s30 }
 0x36e   :  { %v377_v40 = vpop.xlane.xlu1 %376 }
 0x36f   :  { %4999 = vrcp.f32 %v377_v40 }
 0x372   :  { %v609_v43 = vpop.permute.xlu1 %608 }
 0x379   :  { %v5000_v41 = vpop.eup %4999 }
 0x37a   :  { %v381_v42 = vmul.f32 %v5000_v41, %v4996_v34 }
 0x37c   :  { %4514 = vmatmul.mubr.msk.f32.vlgmr.msra.gmra.mrb[6].mxu1 %vm209_vm2, %v381_v42 }
 0x37d   :  { %4522 = vmatpush3.xpose.msk.msra.mxu1 %vm209_vm2, %v609_v43  ;;  %4523 = vmatprep.mubr.msk.f32.mxu1 %vm5072_vm1, %v5071_v8 }
 0x37e   :  { %4531 = vmatprep.subr.mxu1 %v5071_v8 }
 0x380   :  { %4524 = vmatmul.mubr.msk.f32.vlgmr.msra.gmra.mrb[8].mxu1 %vm209_vm2, %v607_v28 }
 0x381   :  { %4533 = vmatprep.mubr.msk.f32.mxu1 %vm5072_vm1, %v5071_v8 }
 0x3a3   :  { %v374_v44 = vpop.xlane.xlu1 %373 }
 0x3a4   :  { %5001 = vrcp.f32 %v374_v44 }
 0x3a7   :  { %v531_v47 = vpop.permute.xlu1 %530 }
 0x3ab   :  { %v1023_v17 = vpop.permute.xlu1 %1022 }
 0x3ae   :  { %v5002_v45 = vpop.eup %5001 }
 0x3af   :  { %v380_v46 = vmul.f32 %v5002_v45, %v4998_v38 }
 0x3b1   :  { %4509 = vmatmul.mubr.msk.f32.vlgmr.msra.gmra.mrb[0].mxu0 %vm209_vm2, %v380_v46 }
 0x3b2   :  { %4517 = vmatpush3.xpose.msk.msra.mxu0 %vm209_vm2, %v531_v47  ;;  %4518 = vmatprep.mubr.msk.f32.mxu0 %vm5072_vm1, %v5071_v8 }
 0x3b3   :  { %4526 = vmatprep.subr.mxu0 %v5071_v8 }
 0x3b5   :  { %4519 = vmatmul.mubr.msk.f32.vlgmr.msra.gmra.mrb[2].mxu0 %vm209_vm2, %v529_v48 }
 0x3b6   :  { %4528 = vmatprep.mubr.msk.f32.mxu0 %vm5072_vm1, %v5071_v8 }
 0x44f   :  { %v5346_v49 = vpop.f32.mrb[6].mxu1 }
 0x450   :  { %v4515_v50 = vpop.f32.mrb[7].mxu1 }
 0x453   :  { %v680_v51 = vpop.f32.mrb[8].mxu1 }
 0x454   :  { %v681_v52 = vadd.f32 %v680_v51, %v5309_v19  ;;  %v4525_v53 = vpop.f32.mrb[9].mxu1 }
 0x456   :  { %v687_v54 = vsel %vm209_vm2, %v681_v52, -inf }
 0x457   :  { %688 = vmax.xlane.f32.xlu0 %v687_v54 }
 0x46d   :  { %782 = vrot.lane.b32.xlu0 %v5268_v13, %s5078_s8 }
 0x471   :  { %1020 = vrot.lane.b32.xlu0 %v5285_v16, %s5079_s28 }
 0x475   :  { %1100 = vrot.lane.b32.xlu0 %v5268_v13, %s5077_s30 }
 0x484   :  { %v5355_v55 = vpop.f32.mrb[0].mxu0 }
 0x485   :  { %v4510_v56 = vpop.f32.mrb[1].mxu0 }
 0x488   :  { %v602_v57 = vpop.f32.mrb[2].mxu0 }
 0x489   :  { %v4520_v58 = vpop.f32.mrb[3].mxu0  ;;  %v603_v59 = vadd.f32 %v602_v57, %v5309_v19 }
 0x48b   :  { %v684_v60 = vsel %vm209_vm2, %v603_v59, -inf }
 0x494   :  { %685 = vmax.xlane.f32.xlu0 %v684_v60 }
 0x4aa   :  { %706 = vrot.lane.b32.xlu0 %v5265_v12, %s5078_s8 }
 0x4ae   :  { %1198 = vrot.lane.b32.xlu0 %v5265_v12, %s5080_s0 }
 0x4b2   :  { %1435 = vrot.lane.b32.xlu0 %v5265_v12, %s5081_s21 }
 0x4b6   :  { %1513 = vrot.lane.b32.xlu0 %v5268_v13, %s5081_s21  ;;  %s5882_s21 = sld [smem:[#allocation13_spill]] }
 0x4ba   :  { %1433 = vrot.lane.b32.xlu0 %v5285_v16, %s5082_s29 }
 0x4be   :  { %1511 = vrot.lane.b32.xlu0 %v5274_v14, %s5082_s29 }
 0x4e4   :  { %v689_v61 = vpop.xlane.xlu0 %688 }
 0x4e5   :  { %v691_v62 = vsub.f32 %v681_v52, %v689_v61 }
 0x4e7   :  { %v694_v63 = vmul.f32 1.442695, %v691_v62 }
 0x4e8   :  { %v783_v0 = vpop.permute.xlu0 %782 }
 0x4e9   :  { %5003 = vpow2.f32 %v694_v63  ;;  %4532 = vmatpush3.msra.mxu1 %v783_v0 }
 0x4ea   :  { %4546 = vmatprep.subr.mxu1 %v5071_v8 }
 0x4ec   :  { %v1021_v3 = vpop.permute.xlu0 %1020 }
 0x4f0   :  { %v1101_v4 = vpop.permute.xlu0 %1100 }
 0x4f3   :  { %v5004_v1 = vpop.eup %5003 }
 0x4f4   :  { %v699_v2 = vsel %vm209_vm2, %v5004_v1, 0.0 }
 0x4f5   :  { %700 = vadd.xlane.f32.xlu1 %v699_v2 }
 0x506   :  { %1098 = vrot.lane.b32.xlu1 %v5274_v14, %s5079_s28 }
 0x521   :  { %v686_v6 = vpop.xlane.xlu0 %685 }
 0x522   :  { %v690_v9 = vsub.f32 %v603_v59, %v686_v6 }
 0x524   :  { %v692_v10 = vmul.f32 1.442695, %v690_v9 }
 0x525   :  { %v707_v11 = vpop.permute.xlu0 %706 }
 0x526   :  { %5005 = vpow2.f32 %v692_v10  ;;  %4527 = vmatpush3.msra.mxu0 %v707_v11 }
 0x527   :  { %4536 = vmatprep.subr.mxu0 %v206_v25 }
 0x529   :  { %v1199_v39 = vpop.permute.xlu0 %1198 }
 0x52d   :  { %v1436_v54 = vpop.permute.xlu0 %1435 }
 0x530   :  { %v5006_v15 = vpop.eup %5005 }
 0x531   :  { %v696_v16 = vsel %vm209_vm2, %v5006_v15, 0.0  ;;  %v1514_v58 = vpop.permute.xlu0 %1513 }
 0x532   :  { %697 = vadd.xlane.f32.xlu1 %v696_v16 }
 0x535   :  { %v1434_v60 = vpop.permute.xlu0 %1433 }
 0x582   :  { %v701_v18 = vpop.xlane.xlu1 %700 }
 0x583   :  { %5007 = vrcp.f32 %v701_v18 }
 0x586   :  { %v1099_v14 = vpop.permute.xlu1 %1098 }
 0x58d   :  { %v5008_v20 = vpop.eup %5007 }
 0x58e   :  { %v705_v21 = vmul.f32 %v5008_v20, %v5004_v1  ;;  %v1512_v1 = vpop.permute.xlu0 %1511 }
 0x590   :  { %4534 = vmatmul.mubr.msk.f32.vlgmr.msra.gmra.mrb[10].mxu1 %vm209_vm2, %v705_v21 }
 0x591   :  { %4547 = vmatpush3.xpose.msk.msra.mxu1 %vm209_vm2, %v1023_v17  ;;  %4548 = vmatprep.mubr.msk.f32.mxu1 %vm5072_vm1, %v5071_v8 }
 0x592   :  { %4551 = vmatprep.subr.mxu1 %v5071_v8 }
 0x594   :  { %4549 = vmatmul.mubr.msk.f32.vlgmr.msra.gmra.mrb[12].mxu1 %vm209_vm2, %v1021_v3 }
 0x595   :  { %4552 = vmatpush3.xpose.msk.msra.mxu1 %vm209_vm2, %v1101_v4  ;;  %4553 = vmatprep.mubr.msk.f32.mxu1 %vm5072_vm1, %v5071_v8 }
 0x596   :  { %4561 = vmatprep.subr.mxu1 %v5071_v8 }
 0x598   :  { %4554 = vmatmul.mubr.msk.f32.vlgmr.msra.gmra.mrb[14].mxu1 %vm209_vm2, %v1099_v14 }
 0x599   :  { %4563 = vmatprep.mubr.msk.f32.mxu1 %vm5072_vm1, %v5071_v8 }
 0x5bf   :  { %v698_v22 = vpop.xlane.xlu1 %697 }
 0x5c0   :  { %5009 = vrcp.f32 %v698_v22 }
 0x5ca   :  { %v5010_v23 = vpop.eup %5009 }
 0x5cb   :  { %v704_v24 = vmul.f32 %v5010_v23, %v5006_v15 }
 0x5cd   :  { %4529 = vmatmul.mubr.msk.f32.vlgmr.msra.gmra.mrb[4].mxu0 %vm209_vm2, %v704_v24 }
 0x5ce   :  { %4537 = vmatpush3.msra.mxu0 %v206_v25 }
 0x5cf   :  { %4541 = vmatprep.subr.mxu0 %v205_v26 }
 0x663   :  { %v854_v27 = vpop.f32.mrb[10].mxu1 }
 0x664   :  { %v4535_v28 = vpop.f32.mrb[11].mxu1 }
 0x667   :  { %v1094_v29 = vpop.f32.mrb[12].mxu1 }
 0x668   :  { %v1095_v30 = vadd.f32 %v1094_v29, %v5309_v19  ;;  %v4550_v31 = vpop.f32.mrb[13].mxu1 }
 0x66a   :  { %v1176_v32 = vsel %vm209_vm2, %v1095_v30, -inf }
 0x66b   :  { %1177 = vmax.xlane.f32.xlu1 %v1176_v32  ;;  %v1172_v33 = vpop.f32.mrb[14].mxu1 }
 0x66c   :  { %v1173_v34 = vadd.f32 %v1172_v33, %v5309_v19  ;;  %v4555_v35 = vpop.f32.mrb[15].mxu1 }
 0x66e   :  { %v1179_v36 = vsel %vm209_vm2, %v1173_v34, -inf }
 0x66f   :  { %1180 = vmax.xlane.f32.xlu1 %v1179_v36  ;;  %v4268_v36 = vld [vmem:[%s5877_s3] ss:$0 sm:$0xff]  ;;  %s5879_s3 = sld [smem:[#allocation10_spill]] }
 0x6a0   :  { %v778_v37 = vpop.f32.mrb[4].mxu0 }
 0x6a1   :  { %v4530_v38 = vpop.f32.mrb[5].mxu0  ;;  %4538 = vmatprep.mubr.msk.f32.mxu0 %vm209_vm2, %v778_v37 }
 0x6a2   :  { %4539 = vmatmul.mubr.msk.f32.vlgmr.msra.gmra.mrb[6].mxu0 %vm209_vm2, %v854_v27 }
 0x6a3   :  { %4543 = vmatprep.mubr.msk.f32.mxu0 %vm209_vm2, %v5355_v55  ;;  %4542 = vmatpush3.msra.mxu0 %v205_v26 }
 0x6a4   :  { %4556 = vmatprep.subr.mxu0 %v5071_v8 }
 0x6aa   :  { %4544 = vmatmul.mubr.msk.f32.vlgmr.msra.gmra.mrb[6].mxu0 %vm209_vm2, %v5346_v49  ;;  %v207_v49 = vld [vmem:[%s5876_s22 + $0x10] sm:$0xff] }
 0x6ab   :  { %4557 = vmatpush3.msra.mxu0 %v1199_v39  ;;  %4558 = vmatprep.mubr.msk.f32.mxu0 %vm5072_vm1, %v5071_v8 }
 0x6ac   :  { %4566 = vmatprep.subr.mxu0 %v207_v49 }
 0x6f8   :  { %v1178_v40 = vpop.xlane.xlu1 %1177 }
 0x6f9   :  { %v1182_v41 = vsub.f32 %v1095_v30, %v1178_v40 }
 0x6fb   :  { %v1184_v42 = vmul.f32 1.442695, %v1182_v41 }
 0x6fc   :  { %v1181_v43 = vpop.xlane.xlu1 %1180 }
 0x6fd   :  { %5011 = vpow2.f32 %v1184_v42  ;;  %v1183_v44 = vsub.f32 %v1173_v34, %v1181_v43 }
 0x6ff   :  { %v1186_v45 = vmul.f32 1.442695, %v1183_v44 }
 0x701   :  { %5013 = vpow2.f32 %v1186_v45 }
 0x707   :  { %v5012_v46 = vpop.eup %5011 }
 0x708   :  { %v1188_v47 = vsel %vm209_vm2, %v5012_v46, 0.0 }
 0x709   :  { %1189 = vadd.xlane.f32.xlu1 %v1188_v47 }
 0x70b   :  { %v5014_v48 = vpop.eup %5013 }
 0x70c   :  { %v1191_v50 = vsel %vm209_vm2, %v5014_v48, 0.0 }
 0x70d   :  { %1192 = vadd.xlane.f32.xlu1 %v1191_v50 }
 0x71e   :  { %1274 = vrot.lane.b32.xlu1 %v5268_v13, %s5080_s0 }
 0x796   :  { %v1190_v51 = vpop.xlane.xlu1 %1189 }
 0x797   :  { %5015 = vrcp.f32 %v1190_v51 }
 0x79a   :  { %v1193_v52 = vpop.xlane.xlu1 %1192 }
 0x79b   :  { %5017 = vrcp.f32 %v1193_v52 }
 0x79e   :  { %v1275_v53 = vpop.permute.xlu1 %1274 }
 0x79f   :  { %4562 = vmatpush3.msra.mxu1 %v1275_v53 }
 0x7a0   :  { %4571 = vmatprep.subr.mxu1 %v5071_v8 }
 0x7a1   :  { %v5016_v55 = vpop.eup %5015 }
 0x7a2   :  { %v1196_v56 = vmul.f32 %v5016_v55, %v5012_v46 }
 0x7a4   :  { %4559 = vmatmul.mubr.msk.f32.vlgmr.msra.gmra.mrb[8].mxu0 %vm209_vm2, %v1196_v56  ;;  %v2002_v56 = vld [vmem:[%s5878_s1 + $0x10] sm:$0xff] }
 0x7a5   :  { %v5018_v57 = vpop.eup %5017  ;;  %4567 = vmatpush3.msra.mxu0 %v207_v49 }
 0x7a6   :  { %v1197_v59 = vmul.f32 %v5018_v57, %v5014_v48  ;;  %4576 = vmatprep.subr.mxu0 %v5071_v8  ;;  %v2003_v57 = vld [vmem:[%s5878_s1 + $0x18] sm:$0xff] }
 0x7a8   :  { %4564 = vmatmul.mubr.msk.f32.vlgmr.msra.gmra.mrb[16].mxu1 %vm209_vm2, %v1197_v59  ;;  %v1996_v59 = vld [vmem:[%s5879_s3] sm:$0xff] }
 0x7a9   :  { %4572 = vmatpush3.xpose.msk.msra.mxu1 %vm209_vm2, %v1436_v54  ;;  %4573 = vmatprep.mubr.msk.f32.mxu1 %vm5072_vm1, %v5071_v8  ;;  %v2001_v54 = vld [vmem:[%s5878_s1 + $0x8] sm:$0xff] }
 0x7aa   :  { %4581 = vmatprep.subr.mxu1 %v5071_v8 }
 0x7ac   :  { %4574 = vmatmul.mubr.msk.f32.vlgmr.msra.gmra.mrb[18].mxu1 %vm209_vm2, %v1434_v60  ;;  %v1997_v60 = vld [vmem:[%s5879_s3 + $0x8] sm:$0xff] }
 0x7ad   :  { %4583 = vmatprep.mubr.msk.f32.mxu1 %vm5072_vm1, %v5071_v8 }
 0x877   :  { %v1270_v61 = vpop.f32.mrb[8].mxu0 }
 0x878   :  { %v4560_v62 = vpop.f32.mrb[9].mxu0  ;;  %4568 = vmatprep.mubr.msk.f32.mxu0 %vm209_vm2, %v1270_v61  ;;  %v1902_v61 = vld [vmem:[%s5880_s7] sm:$0xff] }
 0x879   :  { %v1903_v62 = vld [vmem:[%s5880_s7 + $0x8] sm:$0xff] }
 0x87b   :  { %v1346_v63 = vpop.f32.mrb[16].mxu1 }
 0x87c   :  { %v4565_v0 = vpop.f32.mrb[17].mxu1  ;;  %4569 = vmatmul.mubr.msk.f32.vlgmr.msra.gmra.mrb[6].mxu0 %vm209_vm2, %v1346_v63  ;;  %v1998_v63 = vld [vmem:[%s5879_s3 + $0x10] sm:$0xff] }
 0x87d   :  { %4577 = vmatpush3.xpose.msk.msra.mxu0 %vm209_vm2, %v1514_v58  ;;  %4578 = vmatprep.mubr.msk.f32.mxu0 %vm5072_vm1, %v5071_v8  ;;  %v4817_v58 = vpack.c.bf16 %v2003_v57, %v2002_v56  ;;  %v4805_v0 = vpack.c.bf16 %v1903_v62, %v1902_v61  ;;  %v4279_v56 = vld [vmem:[%s5837_s14] ss:$0 sm:$0xff] }
 0x87e   :  { %4586 = vmatprep.subr.mxu0 %v5071_v8 }
 0x87f   :  { %v1507_v2 = vpop.f32.mrb[18].mxu1 }
 0x880   :  { %v1508_v3 = vadd.f32 %v1507_v2, %v5309_v19  ;;  %v4575_v4 = vpop.f32.mrb[19].mxu1  ;;  %4579 = vmatmul.mubr.msk.f32.vlgmr.msra.gmra.mrb[10].mxu0 %vm209_vm2, %v1512_v1  ;;  %v1999_v1 = vld [vmem:[%s5879_s3 + $0x18] sm:$0xff]  ;;  %v1904_v2 = vld [vmem:[%s5880_s7 + $0x10] sm:$0xff] }
 0x881   :  { %4588 = vmatprep.mubr.msk.f32.mxu0 %vm5072_vm1, %v5071_v8 }
 0x882   :  { %v1589_v6 = vsel %vm209_vm2, %v1508_v3, -inf }
 0x883   :  { %1590 = vmax.xlane.f32.xlu1 %v1589_v6 }
 0x910   :  { %v1591_v9 = vpop.xlane.xlu1 %1590 }
 0x911   :  { %v1595_v10 = vsub.f32 %v1508_v3, %v1591_v9  ;;  %v1905_v3 = vld [vmem:[%s5880_s7 + $0x18] sm:$0xff] }
 0x912   :  { %v4809_v4 = vpack.c.bf16 %v1905_v3, %v1904_v2  ;;  %v5591_v3 = vld [vmem:[%s5838_s4 + $0x1] ss:$0 sm:$0xff] }
 0x913   :  { %v1597_v11 = vmul.f32 1.442695, %v1595_v10 }
 0x915   :  { %5019 = vpow2.f32 %v1597_v11  ;;  %v5084_v11 = vmov 0.0|0.0  }
 0x91f   :  { %v5020_v20 = vpop.eup %5019 }
 0x920   :  { %v1601_v21 = vsel %vm209_vm2, %v5020_v20, 0.0 }
 0x953   :  { %v1585_v15 = vpop.f32.mrb[10].mxu0 }
 0x954   :  { %v1586_v16 = vadd.f32 %v1585_v15, %v5309_v19  ;;  %v4580_v17 = vpop.f32.mrb[11].mxu0 }
 0x956   :  { %v1592_v18 = vsel %vm209_vm2, %v1586_v16, -inf }
 0x957   :  { %1593 = vmax.xlane.f32.xlu0 %v1592_v18 }
 0x95b   :  { %1602 = vadd.xlane.f32.xlu0 %v1601_v21 }
 0x971   :  { %1611 = vrot.lane.b32.xlu0 %v5265_v12, %s5083_s9  ;;  %v208_v12 = vld [vmem:[%s5876_s22 + $0x18] sm:$0xff] }
 0x9e4   :  { %v1594_v14 = vpop.xlane.xlu0 %1593 }
 0x9e5   :  { %v1596_v22 = vsub.f32 %v1586_v16, %v1594_v14 }
 0x9e7   :  { %v1599_v23 = vmul.f32 1.442695, %v1596_v22  ;;  %v4269_v22 = vld [vmem:[%s5882_s21] ss:$0 sm:$0xff] }
 0x9e8   :  { %v1603_v24 = vpop.xlane.xlu0 %1602 }
 0x9e9   :  { %5021 = vpow2.f32 %v1599_v23 }
 0x9ea   :  { %5023 = vrcp.f32 %v1603_v24 }
 0x9ec   :  { %v1612_v25 = vpop.permute.xlu0 %1611 }
 0x9ed   :  { %4582 = vmatpush3.msra.mxu1 %v1612_v25 }
 0x9ee   :  { %4806 = vmatprep.subr.bf16.mxu1 %v4805_v0 }
 0x9f3   :  { %v5022_v19 = vpop.eup %5021 }
 0x9f4   :  { %v5024_v26 = vpop.eup %5023  ;;  %v1604_v27 = vsel %vm209_vm2, %v5022_v19, 0.0 }
 0x9f5   :  { %v1609_v28 = vmul.f32 %v5024_v26, %v5020_v20  ;;  %1605 = vadd.xlane.f32.xlu1 %v1604_v27 }
 0x9f7   :  { %4584 = vmatmul.mubr.msk.f32.vlgmr.msra.gmra.mrb[20].mxu1 %vm209_vm2, %v1609_v28 }
 0x9f8   :  { %4808 = vmatpush3.bf16.msra.mxu1 %v4805_v0 }
 0x9f9   :  { %4810 = vmatprep.subr.bf16.mxu1 %v4809_v4 }
 0x9fc   :  { %4812 = vmatpush3.bf16.msra.mxu1 %v4809_v4  ;;  %v5596_v4 = vld [vmem:[%s5838_s4] ss:$0 sm:$0xff] }
 0xa06   :  { %1687 = vrot.lane.b32.xlu1 %v5268_v13, %s5083_s9  ;;  %s5881_s9 = sld [smem:[#allocation12_spill]] }
 0xa0c   :  { %v2112_v6 = vld [vmem:[%s5881_s9] sm:$0xff]  ;;  %v2113_v9 = vld [vmem:[%s5881_s9 + $0x8] sm:$0xff]  ;;  %v2114_v28 = vld [vmem:[%s5881_s9 + $0x10] sm:$0xff] }
 0xa0d   :  { %v4821_v10 = vpack.c.bf16 %v2113_v9, %v2112_v6 }
 0xa0f   :  { %4822 = vmatprep.subr.bf16.mxu1 %v4821_v10 }
 0xa82   :  { %v1606_v29 = vpop.xlane.xlu1 %1605 }
 0xa83   :  { %5025 = vrcp.f32 %v1606_v29  ;;  %v2115_v29 = vld [vmem:[%s5881_s9 + $0x18] sm:$0xff] }
 0xa86   :  { %v1688_v30 = vpop.permute.xlu1 %1687 }
 0xa87   :  { %4587 = vmatpush3.msra.mxu0 %v1688_v30 }
 0xa88   :  { %4591 = vmatprep.subr.mxu0 %v208_v12 }
 0xa8d   :  { %v5026_v31 = vpop.eup %5025 }
 0xa8e   :  { %v1610_v32 = vmul.f32 %v5026_v31, %v5022_v19  ;;  %v4270_v19 = vld [vmem:[%s5883_s5] ss:$0 sm:$0xff]  ;;  %v4825_v31 = vpack.c.bf16 %v2115_v29, %v2114_v28 }
 0xa90   :  { %4589 = vmatmul.mubr.msk.f32.vlgmr.msra.gmra.mrb[12].mxu0 %vm209_vm2, %v1610_v32  ;;  %v2108_v32 = vld [vmem:[%s5834_s2] sm:$0xff] }
 0xa91   :  { %4592 = vmatpush3.msra.mxu0 %v208_v12 }
 0xaca   :  { %v1683_v33 = vpop.f32.mrb[20].mxu1 }
 0xacb   :  { %v4585_v34 = vpop.f32.mrb[21].mxu1  ;;  %4593 = vmatprep.mubr.msk.f32.mxu0 %vm209_vm2, %v1683_v33  ;;  %v2109_v33 = vld [vmem:[%s5834_s2 + $0x8] sm:$0xff] }
 0xacc   :  { %v4274_v34 = vld [vmem:[%s5835_s12] ss:$0 sm:$0xff] }
 0xb63   :  { %v1759_v35 = vpop.f32.mrb[12].mxu0 }
 0xb64   :  { %v4590_v13 = vpop.f32.mrb[13].mxu0  ;;  %4594 = vmatmul.mubr.msk.f32.vlgmr.msra.gmra.mrb[6].mxu0 %vm209_vm2, %v1759_v35 }
 0xb65   :  { %4615 = vmatprep.mubr.msk.f32.mxu0 %vm101_vm0, %v1996_v59 }
 0xc37   :  { %v4595_v37 = vpop.f32.mrb[6].mxu0 }
 0xc38   :  { %v1854_v38 = vadd.f32 %v4595_v37, %v4268_v36  ;;  %v1835_v39 = vpop.f32.mrb[7].mxu0 }
 0xc39   :  { %v1853_v40 = vadd.f32 %v4268_v36, %v1835_v39 }
 0xc3a   :  { %v1856_v41 = vadd.f32 %v1854_v38, %v5252_v7 }
 0xc3b   :  { %v1855_v42 = vadd.f32 %v1853_v40, %v5245_v5  ;;  %v2000_v5 = vld [vmem:[%s5878_s1] sm:$0xff] }
 0xc3c   :  { %v1862_v43 = vsel %vm101_vm0, %v1856_v41, 0.0  ;;  %v4813_v55 = vpack.c.bf16 %v2001_v54, %v2000_v5 }
 0xc3d   :  { %1863 = vadd.xlane.f32.xlu0 %v1862_v43  ;;  %v1859_v44 = vsel %vm101_vm0, %v1855_v42, 0.0 }
 0xc3e   :  { %1860 = vadd.xlane.f32.xlu1 %v1859_v44  ;;  %4814 = vmatprep.subr.bf16.mxu0 %v4813_v55 }
 0xc3f   :  { %4816 = vmatpush3.bf16.msra.mxu0 %v4813_v55 }
 0xc40   :  { %4818 = vmatprep.subr.bf16.mxu0 %v4817_v58 }
 0xc43   :  { %4820 = vmatpush3.bf16.msra.mxu0 %v4817_v58 }
 0xc44   :  { %4829 = vmatprep.subr.bf16.mxu0 %v5084_v11 }
 0xc46   :  { %4616 = vmatmul.mubr.msk.f32.vlgmr.msra.gmra.mrb[14].mxu0 %vm101_vm0, %v1997_v60 }
 0xc47   :  { %4618 = vmatprep.mubr.msk.f32.mxu0 %vm101_vm0, %v1998_v63 }
 0xc4a   :  { %4619 = vmatmul.mubr.msk.f32.gmra.mrb[16].mxu0 %vm101_vm0, %v1999_v1 }
 0xc4b   :  { %4639 = vmatprep.mubr.msk.f32.mxu0 %vm5072_vm1, %v5071_v8 }
 0xcca   :  { %v1864_v45 = vpop.xlane.xlu0 %1863 }
 0xccb   :  { %v1867_v46 = vmul.f32 0.03125, %v1864_v45  ;;  %v1861_v47 = vpop.xlane.xlu1 %1860 }
 0xccc   :  { %v1866_v48 = vmul.f32 0.03125, %v1861_v47  ;;  %v2110_v47 = vld [vmem:[%s5834_s2 + $0x10] sm:$0xff] }
 0xccd   :  { %v1869_v50 = vsub.f32 %v1856_v41, %v1867_v46 }
 0xcce   :  { %v1868_v49 = vsub.f32 %v1855_v42, %v1866_v48  ;;  %v2111_v48 = vld [vmem:[%s5834_s2 + $0x18] sm:$0xff] }
 0xccf   :  { %v1871_v51 = vmul.f32 %v1869_v50, %v1869_v50 }
 0xcd0   :  { %v1870_v52 = vmul.f32 %v1868_v49, %v1868_v49 }
 0xcd1   :  { %v1875_v53 = vsel %vm101_vm0, %v1871_v51, 0.0 }
 0xcd2   :  { %1876 = vadd.xlane.f32.xlu1 %v1875_v53  ;;  %v1872_v7 = vsel %vm101_vm0, %v1870_v52, 0.0 }
 0xcd3   :  { %1873 = vadd.xlane.f32.xlu0 %v1872_v7 }
 0xd19   :  { %v4617_v35 = vpop.f32.mrb[14].mxu0 }
 0xd1a   :  { %v2095_v13 = vadd.f32 %v4617_v35, %v4274_v34  ;;  %v2089_v36 = vpop.f32.mrb[15].mxu0 }
 0xd1b   :  { %v2090_v37 = vadd.f32 %v4274_v34, %v2089_v36 }
 0xd1d   :  { %v4830_v39 = vpack.c.bf16 %v2095_v13, %v2090_v37  ;;  %v4620_v40 = vpop.f32.mrb[16].mxu0  ;;  %v5544_v43 = vpack.i.bf16 %v2095_v13, %v2090_v37 }
 0xd1e   :  { %v2105_v41 = vadd.f32 %v4620_v40, %v4274_v34  ;;  %v2099_v42 = vpop.f32.mrb[17].mxu0 }
 0xd1f   :  { %v2100_v44 = vadd.f32 %v4274_v34, %v2099_v42  ;;  %4832 = vmatpush3.bf16.xpose.msk.msra.mxu0 %vm5540_vm3, %v4830_v39 }
 0xd20   :  { %4837 = vmatprep.subr.bf16.mxu0 %v5084_v11 }
 0xd21   :  { %v4834_v45 = vpack.c.bf16 %v2105_v41, %v2100_v44  ;;  %v5549_v46 = vpack.i.bf16 %v2105_v41, %v2100_v44 }
 0xd5f   :  { %v1877_v15 = vpop.xlane.xlu1 %1876 }
 0xd60   :  { %v1879_v16 = vmul.f32 0.03125, %v1877_v15  ;;  %v1874_v17 = vpop.xlane.xlu0 %1873 }
 0xd61   :  { %v1878_v18 = vmul.f32 0.03125, %v1874_v17 }
 0xd62   :  { %v1881_v20 = vadd.f32 1e-05, %v1879_v16 }
 0xd63   :  { %v1880_v21 = vadd.f32 1e-05, %v1878_v18 }
 0xd64   :  { %5027 = vrsqrt.f32 %v1881_v20 }
 0xd65   :  { %5029 = vrsqrt.f32 %v1880_v21 }
 0xd6e   :  { %v5028_v14 = vpop.eup %5027 }
 0xd6f   :  { %v5030_v23 = vpop.eup %5029  ;;  %v1885_v24 = vmul.f32 %v5028_v14, %v1869_v50  ;;  %v4271_v50 = vld [vmem:[%s5836_s10] ss:$0 sm:$0xff] }
 0xd70   :  { %v1884_v25 = vmul.f32 %v5030_v23, %v1868_v49 }
 0xd71   :  { %v1893_v26 = vmul.f32 %v4269_v22, %v1885_v24 }
 0xd72   :  { %v1892_v27 = vmul.f32 %v4269_v22, %v1884_v25 }
 0xd73   :  { %v5520_v30 = vadd.f32 %v4270_v19, %v1893_v26 }
 0xd74   :  { %v5518_v12 = vadd.f32 %v4270_v19, %v1892_v27 }
 0xd76   :  { %4604 = vmatprep.mubr.msk.f32.mxu1 %vm101_vm0, %v5518_v12 }
 0xd77   :  { %4605 = vmatmul.mubr.msk.f32.vlgmr.msra.gmra.mrb[22].mxu1 %vm101_vm0, %v5520_v30 }
 0xd78   :  { %4824 = vmatpush3.bf16.msra.mxu1 %v4821_v10  ;;  %4629 = vmatprep.mubr.msk.f32.mxu1 %vm101_vm0, %v2108_v32 }
 0xd79   :  { %4826 = vmatprep.subr.bf16.mxu1 %v4825_v31 }
 0xd7c   :  { %4828 = vmatpush3.bf16.msra.mxu1 %v4825_v31 }
 0xd7d   :  { %4833 = vmatprep.subr.bf16.mxu1 %v5084_v11 }
 0xd7f   :  { %4630 = vmatmul.mubr.msk.f32.vlgmr.msra.gmra.mrb[24].mxu1 %vm101_vm0, %v2109_v33 }
 0xd80   :  { %4632 = vmatprep.mubr.msk.f32.mxu1 %vm101_vm0, %v2110_v47 }
 0xd83   :  { %4633 = vmatmul.mubr.msk.f32.gmra.mrb[26].mxu1 %vm101_vm0, %v2111_v48 }
 0xd84   :  { %4646 = vmatprep.mubr.msk.f32.mxu1 %vm5072_vm1, %v5071_v8 }
 0xd85   :  { %4836 = vmatpush3.bf16.xpose.msk.msra.mxu1 %vm5540_vm3, %v4834_v45 }
 0xd86   :  { %4840 = vmatprep.subr.bf16.mxu1 %v5084_v11 }
 0xe4a   :  { %v4606_v49 = vpop.f32.mrb[22].mxu1 }
 0xe4b   :  { %v1991_v51 = vadd.f32 %v4606_v49, %v4271_v50  ;;  %v1985_v52 = vpop.f32.mrb[23].mxu1 }
 0xe4c   :  { %v1986_v53 = vadd.f32 %v4271_v50, %v1985_v52 }
 0xe4d   :  { %v5567_v7 = vmul.f32 0.35355338, %v1991_v51 }
 0xe4e   :  { %v5569_v5 = vmul.f32 0.35355338, %v1986_v53 }
 0xe4f   :  { %4647 = vmatmul.mubr.msk.f32.vlgmr.msra.gmra.mrb[28].mxu1 %vm209_vm2, %v5567_v7 }
 0xe50   :  { %4640 = vmatmul.mubr.msk.f32.vlgmr.msra.gmra.mrb[18].mxu0 %vm209_vm2, %v5569_v5  ;;  %4660 = vmatprep.mubr.msk.f32.mxu1 %vm5072_vm1, %v5071_v8 }
 0xe51   :  { %4653 = vmatprep.mubr.msk.f32.mxu0 %vm5072_vm1, %v5071_v8 }
 0xe52   :  { %v4631_v54 = vpop.f32.mrb[24].mxu1 }
 0xe53   :  { %v2201_v55 = vpop.f32.mrb[25].mxu1  ;;  %v2207_v57 = vadd.f32 %v4631_v54, %v4279_v56 }
 0xe54   :  { %v2202_v58 = vadd.f32 %v4279_v56, %v2201_v55 }
 0xe56   :  { %v4634_v59 = vpop.f32.mrb[26].mxu1  ;;  %v4838_v62 = vpack.c.bf16 %v2207_v57, %v2202_v58  ;;  %v5582_v63 = vpack.i.bf16 %v2207_v57, %v2202_v58 }
 0xe57   :  { %v2217_v60 = vadd.f32 %v4634_v59, %v4279_v56  ;;  %v2211_v61 = vpop.f32.mrb[27].mxu1 }
 0xe58   :  { %v2212_v0 = vadd.f32 %v4279_v56, %v2211_v61  ;;  %4839 = vmatpush3.bf16.msra.mxu0 %v4838_v62 }
 0xe59   :  { %4843 = vmatprep.subr.bf16.mxu0 %v5084_v11 }
 0xe5a   :  { %v4841_v1 = vpack.c.bf16 %v2217_v60, %v2212_v0  ;;  %v5585_v2 = vpack.i.bf16 %v2217_v60, %v2212_v0 }
 0xe5c   :  { %4842 = vmatpush3.bf16.msra.mxu1 %v4841_v1 }
 0xe5d   :  { %4847 = vmatprep.subr.bf16.mxu1 %v5084_v11 }
 0xf22   :  { %v2392_v6 = vpop.f32.mrb[28].mxu1 }
 0xf23   :  { %v2393_v9 = vadd.f32 %v5591_v3, %v2392_v6  ;;  %v2313_v10 = vpop.f32.mrb[18].mxu0  ;;  %v4648_v15 = vpop.f32.mrb[29].mxu1 }
 0xf24   :  { %v2314_v16 = vadd.f32 %v5596_v4, %v2313_v10  ;;  %v4641_v17 = vpop.f32.mrb[19].mxu0 }
 0xf25   :  { %v2400_v18 = vsel %vm2396_vm4, %v2393_v9, -inf }
 0xf26   :  { %2401 = vmax.xlane.f32.xlu1 %v2400_v18  ;;  %v2397_v20 = vsel %vm2396_vm4, %v2314_v16, -inf }
 0xf27   :  { %2398 = vmax.xlane.f32.xlu0 %v2397_v20 }
 0xfb3   :  { %v2402_v21 = vpop.xlane.xlu1 %2401 }
 0xfb4   :  { %v2404_v14 = vsub.f32 %v2393_v9, %v2402_v21  ;;  %v2399_v22 = vpop.xlane.xlu0 %2398 }
 0xfb5   :  { %v2403_v23 = vsub.f32 %v2314_v16, %v2399_v22 }
 0xfb6   :  { %v2407_v24 = vmul.f32 1.442695, %v2404_v14 }
 0xfb7   :  { %v2405_v25 = vmul.f32 1.442695, %v2403_v23 }
 0xfb8   :  { %5031 = vpow2.f32 %v2407_v24 }
 0xfb9   :  { %5033 = vpow2.f32 %v2405_v25 }
 0xfc2   :  { %v5032_v19 = vpop.eup %5031 }
 0xfc3   :  { %v5034_v26 = vpop.eup %5033  ;;  %v2412_v27 = vsel %vm2396_vm4, %v5032_v19, 0.0 }
 0xfc4   :  { %2413 = vadd.xlane.f32.xlu1 %v2412_v27  ;;  %v2409_v28 = vsel %vm2396_vm4, %v5034_v26, 0.0 }
 0xfc5   :  { %2410 = vadd.xlane.f32.xlu0 %v2409_v28 }
 0xfd5   :  { %4941 = vrot.lane.b32.xlu1 %v5549_v46, %s5075_s13 }
 0xfd9   :  { %2565 = vrot.lane.b32.xlu1 %v5569_v5, %s5075_s13 }
 0xfdb   :  { %4936 = vrot.lane.b32.xlu0 %v5544_v43, %s5075_s13 }
 0xfdf   :  { %2647 = vrot.lane.b32.xlu0 %v5567_v7, %s5075_s13 }
0x1051   :  { %v2414_v29 = vpop.xlane.xlu1 %2413 }
0x1052   :  { %5035 = vrcp.f32 %v2414_v29  ;;  %v2411_v31 = vpop.xlane.xlu0 %2410 }
0x1053   :  { %5037 = vrcp.f32 %v2411_v31 }
0x1055   :  { %v4942_v32 = vpop.permute.xlu1 %4941 }
0x1056   :  { %v4937_v33 = vpop.permute.xlu0 %4936  ;;  %v4944_v34 = vunpack.i.h.bf16 %v4942_v32  ;;  %v4943_v35 = vunpack.i.l.bf16 %v4942_v32 }
0x1057   :  { %v4939_v13 = vunpack.i.h.bf16 %v4937_v33  ;;  %v4938_v36 = vunpack.i.l.bf16 %v4937_v33 }
0x1058   :  { %v4848_v42 = vpack.c.bf16 %v4944_v34, %v4943_v35 }
0x1059   :  { %v4844_v44 = vpack.c.bf16 %v4939_v13, %v4938_v36  ;;  %v2566_v47 = vpop.permute.xlu1 %2565  ;;  %v2222_v36 = vld [vmem:[%s5839_s15] sm:$0xff] }
0x105a   :  { %v2648_v45 = vpop.permute.xlu0 %2647 }
0x105c   :  { %v5036_v37 = vpop.eup %5035 }
0x105d   :  { %v5038_v39 = vpop.eup %5037  ;;  %v2418_v40 = vmul.f32 %v5036_v37, %v5032_v19 }
0x105e   :  { %v2417_v41 = vmul.f32 %v5038_v39, %v5034_v26  ;;  %v2223_v26 = vld [vmem:[%s5839_s15 + $0x8] sm:$0xff] }
0x105f   :  { %4661 = vmatmul.mubr.msk.f32.vlgmr.msra.gmra.mrb[30].mxu1 %vm2396_vm4, %v2418_v40 }
0x1060   :  { %4850 = vmatpush3.bf16.xpose.msk.msra.mxu1 %vm5540_vm3, %v4848_v42  ;;  %4654 = vmatmul.mubr.msk.f32.vlgmr.msra.gmra.mrb[20].mxu0 %vm2396_vm4, %v2417_v41 }
0x1061   :  { %4846 = vmatpush3.bf16.xpose.msk.msra.mxu0 %vm5540_vm3, %v4844_v44  ;;  %4674 = vmatprep.mubr.msk.f32.mxu1 %vm5072_vm1, %v5071_v8 }
0x1062   :  { %4667 = vmatprep.mubr.msk.f32.mxu0 %vm5072_vm1, %v5071_v8  ;;  %4854 = vmatprep.subr.bf16.mxu1 %v5084_v11 }
0x1063   :  { %4851 = vmatprep.subr.bf16.mxu0 %v5084_v11 }
0x1067   :  { %4675 = vmatmul.mubr.msk.f32.vlgmr.msra.gmra.mrb[32].mxu1 %vm209_vm2, %v2648_v45 }
0x1068   :  { %4668 = vmatmul.mubr.msk.f32.vlgmr.msra.gmra.mrb[22].mxu0 %vm209_vm2, %v2566_v47  ;;  %4688 = vmatprep.mubr.msk.f32.mxu1 %vm5072_vm1, %v5071_v8 }
0x1069   :  { %4681 = vmatprep.mubr.msk.f32.mxu0 %vm5072_vm1, %v5071_v8 }
0x1132   :  { %v5630_v48 = vpop.f32.mrb[30].mxu1 }
0x1133   :  { %v5632_v50 = vpop.f32.mrb[20].mxu0  ;;  %v4662_v49 = vpop.f32.mrb[31].mxu1 }
0x1134   :  { %v4655_v51 = vpop.f32.mrb[21].mxu0 }
0x113a   :  { %v2725_v52 = vpop.f32.mrb[32].mxu1 }
0x113b   :  { %v2726_v53 = vadd.f32 %v5591_v3, %v2725_v52  ;;  %v2643_v54 = vpop.f32.mrb[22].mxu0  ;;  %v4676_v55 = vpop.f32.mrb[33].mxu1 }
0x113c   :  { %v2644_v56 = vadd.f32 %v5596_v4, %v2643_v54  ;;  %v4669_v57 = vpop.f32.mrb[23].mxu0 }
0x113d   :  { %v2732_v58 = vsel %vm2396_vm4, %v2726_v53, -inf }
0x113e   :  { %2733 = vmax.xlane.f32.xlu0 %v2732_v58  ;;  %v2729_v59 = vsel %vm2396_vm4, %v2644_v56, -inf }
0x113f   :  { %2730 = vmax.xlane.f32.xlu1 %v2729_v59 }
0x11cb   :  { %v2734_v60 = vpop.xlane.xlu0 %2733 }
0x11cc   :  { %v2736_v61 = vsub.f32 %v2726_v53, %v2734_v60  ;;  %v2731_v62 = vpop.xlane.xlu1 %2730 }
0x11cd   :  { %v2735_v0 = vsub.f32 %v2644_v56, %v2731_v62 }
0x11ce   :  { %v2739_v1 = vmul.f32 1.442695, %v2736_v61 }
0x11cf   :  { %v2737_v6 = vmul.f32 1.442695, %v2735_v0 }
0x11d0   :  { %5039 = vpow2.f32 %v2739_v1 }
0x11d1   :  { %5041 = vpow2.f32 %v2737_v6 }
0x11da   :  { %v5040_v9 = vpop.eup %5039 }
0x11db   :  { %v5042_v10 = vpop.eup %5041  ;;  %v2744_v15 = vsel %vm2396_vm4, %v5040_v9, 0.0 }
0x11dc   :  { %2745 = vadd.xlane.f32.xlu1 %v2744_v15  ;;  %v2741_v16 = vsel %vm2396_vm4, %v5042_v10, 0.0 }
0x11dd   :  { %2742 = vadd.xlane.f32.xlu0 %v2741_v16 }
0x11ed   :  { %4951 = vrot.lane.b32.xlu1 %v5585_v2, %s5075_s13 }
0x11f1   :  { %4956 = vrot.lane.b32.xlu1 %v5544_v43, %s5079_s28 }
0x11f3   :  { %4946 = vrot.lane.b32.xlu0 %v5582_v63, %s5075_s13 }
0x11f5   :  { %3075 = vrot.lane.b32.xlu1 %v5569_v5, %s5079_s28 }
0x11f7   :  { %4961 = vrot.lane.b32.xlu0 %v5549_v46, %s5079_s28 }
0x11fb   :  { %3157 = vrot.lane.b32.xlu0 %v5567_v7, %s5079_s28 }
0x1269   :  { %v2746_v17 = vpop.xlane.xlu1 %2745 }
0x126a   :  { %5043 = vrcp.f32 %v2746_v17  ;;  %v2743_v18 = vpop.xlane.xlu0 %2742 }
0x126b   :  { %5045 = vrcp.f32 %v2743_v18 }
0x126d   :  { %v4952_v20 = vpop.permute.xlu1 %4951 }
0x126e   :  { %v4954_v21 = vunpack.i.h.bf16 %v4952_v20  ;;  %v4953_v14 = vunpack.i.l.bf16 %v4952_v20  ;;  %v4947_v22 = vpop.permute.xlu0 %4946 }
0x126f   :  { %v4949_v23 = vunpack.i.h.bf16 %v4947_v22  ;;  %v4948_v24 = vunpack.i.l.bf16 %v4947_v22 }
0x1270   :  { %v4855_v25 = vpack.c.bf16 %v4954_v21, %v4953_v14 }
0x1271   :  { %v4852_v19 = vpack.c.bf16 %v4949_v23, %v4948_v24  ;;  %v4957_v27 = vpop.permute.xlu1 %4956 }
0x1272   :  { %4856 = vmatpush3.bf16.msra.mxu1 %v4855_v25  ;;  %v4959_v32 = vunpack.i.h.bf16 %v4957_v27  ;;  %v4958_v33 = vunpack.i.l.bf16 %v4957_v27  ;;  %v4962_v42 = vpop.permute.xlu0 %4961 }
0x1273   :  { %4853 = vmatpush3.bf16.msra.mxu0 %v4852_v19  ;;  %4857 = vmatprep.subr.bf16.mxu1 %v5084_v11  ;;  %v4964_v44 = vunpack.i.h.bf16 %v4962_v42  ;;  %v4963_v45 = vunpack.i.l.bf16 %v4962_v42 }
0x1274   :  { %v5044_v28 = vpop.eup %5043  ;;  %4691 = vmatprep.subr.mxu0 %v2223_v26  ;;  %v4858_v35 = vpack.c.bf16 %v4959_v32, %v4958_v33 }
0x1275   :  { %v5046_v29 = vpop.eup %5045  ;;  %v2750_v31 = vmul.f32 %v5044_v28, %v5040_v9  ;;  %v3076_v13 = vpop.permute.xlu1 %3075  ;;  %v4862_v47 = vpack.c.bf16 %v4964_v44, %v4963_v45 }
0x1276   :  { %v2749_v34 = vmul.f32 %v5046_v29, %v5042_v10  ;;  %v3158_v53 = vpop.permute.xlu0 %3157 }
0x1277   :  { %4689 = vmatmul.mubr.msk.f32.vlgmr.msra.gmra.mrb[34].mxu1 %vm2396_vm4, %v2750_v31 }
0x1278   :  { %4682 = vmatmul.mubr.msk.f32.vlgmr.msra.gmra.mrb[24].mxu0 %vm2396_vm4, %v2749_v34  ;;  %4705 = vmatprep.mubr.msk.f32.mxu1 %vm5072_vm1, %v5071_v8 }
0x1279   :  { %4692 = vmatpush3.msra.mxu0 %v2223_v26 }
0x127a   :  { %4696 = vmatprep.subr.mxu0 %v2222_v36 }
0x127b   :  { %4860 = vmatpush3.bf16.xpose.msk.msra.mxu1 %vm5540_vm3, %v4858_v35 }
0x127c   :  { %4865 = vmatprep.subr.bf16.mxu1 %v5084_v11 }
0x1282   :  { %4706 = vmatmul.mubr.msk.f32.vlgmr.msra.gmra.mrb[36].mxu1 %vm209_vm2, %v3076_v13 }
0x1283   :  { %4719 = vmatprep.mubr.msk.f32.mxu1 %vm5072_vm1, %v5071_v8 }
0x134a   :  { %v2909_v37 = vpop.f32.mrb[34].mxu1 }
0x134b   :  { %v2828_v39 = vpop.f32.mrb[24].mxu0  ;;  %v4690_v40 = vpop.f32.mrb[35].mxu1 }
0x134c   :  { %v4683_v41 = vpop.f32.mrb[25].mxu0  ;;  %4693 = vmatprep.mubr.msk.f32.mxu0 %vm209_vm2, %v2828_v39 }
0x134d   :  { %4694 = vmatmul.mubr.msk.f32.vlgmr.msra.gmra.mrb[26].mxu0 %vm209_vm2, %v2909_v37 }
0x134e   :  { %4697 = vmatpush3.msra.mxu0 %v2222_v36  ;;  %4698 = vmatprep.mubr.msk.f32.mxu0 %vm209_vm2, %v5632_v50 }
0x134f   :  { %4861 = vmatprep.subr.bf16.mxu0 %v5084_v11 }
0x1355   :  { %4699 = vmatmul.mubr.msk.f32.vlgmr.msra.gmra.mrb[26].mxu0 %vm209_vm2, %v5630_v48  ;;  %v3153_v49 = vpop.f32.mrb[36].mxu1 }
0x1356   :  { %v3154_v51 = vadd.f32 %v5596_v4, %v3153_v49  ;;  %4864 = vmatpush3.bf16.xpose.msk.msra.mxu0 %vm5540_vm3, %v4862_v47  ;;  %v4707_v52 = vpop.f32.mrb[37].mxu1  ;;  %4712 = vmatprep.mubr.msk.f32.mxu0 %vm5072_vm1, %v5071_v8 }
0x1358   :  { %v3239_v50 = vsel %vm2396_vm4, %v3154_v51, -inf }
0x1359   :  { %3240 = vmax.xlane.f32.xlu1 %v3239_v50 }
0x135d   :  { %4713 = vmatmul.mubr.msk.f32.vlgmr.msra.gmra.mrb[28].mxu0 %vm209_vm2, %v3158_v53 }
0x13e6   :  { %v3241_v54 = vpop.xlane.xlu1 %3240 }
0x13e7   :  { %v3245_v55 = vsub.f32 %v3154_v51, %v3241_v54 }
0x13e9   :  { %v3247_v56 = vmul.f32 1.442695, %v3245_v55 }
0x13eb   :  { %5047 = vpow2.f32 %v3247_v56 }
0x13f5   :  { %v5048_v60 = vpop.eup %5047 }
0x13f6   :  { %v3251_v61 = vsel %vm2396_vm4, %v5048_v60, 0.0 }
0x1430   :  { %v3235_v48 = vpop.f32.mrb[28].mxu0 }
0x1431   :  { %v3236_v57 = vadd.f32 %v5591_v3, %v3235_v48  ;;  %v4714_v58 = vpop.f32.mrb[29].mxu0 }
0x1433   :  { %v3242_v59 = vsel %vm2396_vm4, %v3236_v57, -inf }
0x1434   :  { %3243 = vmax.xlane.f32.xlu0 %v3242_v59 }
0x1438   :  { %3252 = vadd.xlane.f32.xlu0 %v3251_v61 }
0x144e   :  { %4966 = vrot.lane.b32.xlu0 %v5582_v63, %s5079_s28 }
0x1452   :  { %4981 = vrot.lane.b32.xlu0 %v5549_v46, %s5082_s29 }
0x1456   :  { %3584 = vrot.lane.b32.xlu0 %v5567_v7, %s5082_s29  ;;  %v2224_v7 = vld [vmem:[%s5839_s15 + $0x10] sm:$0xff] }
0x1457   :  { %4729 = vmatprep.subr.mxu0 %v2224_v7 }
0x1458   :  { %4730 = vmatpush3.msra.mxu0 %v2224_v7 }
0x1459   :  { %4875 = vmatprep.subr.bf16.mxu0 %v5084_v11 }
0x14c1   :  { %v3244_v62 = vpop.xlane.xlu0 %3243 }
0x14c2   :  { %v3246_v0 = vsub.f32 %v3236_v57, %v3244_v62 }
0x14c4   :  { %v3249_v1 = vmul.f32 1.442695, %v3246_v0 }
0x14c5   :  { %v3253_v6 = vpop.xlane.xlu0 %3252 }
0x14c6   :  { %5049 = vpow2.f32 %v3249_v1 }
0x14c7   :  { %5051 = vrcp.f32 %v3253_v6  ;;  %v2225_v6 = vld [vmem:[%s5839_s15 + $0x18] sm:$0xff] }
0x14c9   :  { %v4967_v9 = vpop.permute.xlu0 %4966 }
0x14ca   :  { %v4969_v10 = vunpack.i.h.bf16 %v4967_v9  ;;  %v4968_v15 = vunpack.i.l.bf16 %v4967_v9 }
0x14cc   :  { %v4866_v16 = vpack.c.bf16 %v4969_v10, %v4968_v15 }
0x14cd   :  { %v4982_v32 = vpop.permute.xlu0 %4981 }
0x14ce   :  { %4867 = vmatpush3.bf16.msra.mxu1 %v4866_v16  ;;  %v4984_v33 = vunpack.i.h.bf16 %v4982_v32  ;;  %v4983_v34 = vunpack.i.l.bf16 %v4982_v32  ;;  %v3985_v32 = vld [vmem:[%s5841_s17 + $0x8] sm:$0xff] }
0x14cf   :  { %4868 = vmatprep.subr.bf16.mxu1 %v5084_v11 }
0x14d0   :  { %v5050_v17 = vpop.eup %5049  ;;  %v4876_v35 = vpack.c.bf16 %v4984_v33, %v4983_v34  ;;  %v3986_v34 = vld [vmem:[%s5841_s17 + $0x10] sm:$0xff] }
0x14d1   :  { %v5052_v18 = vpop.eup %5051  ;;  %v3254_v46 = vsel %vm2396_vm4, %v5050_v17, 0.0  ;;  %v3585_v37 = vpop.permute.xlu0 %3584 }
0x14d2   :  { %v3259_v20 = vmul.f32 %v5052_v18, %v5048_v60  ;;  %3255 = vadd.xlane.f32.xlu1 %v3254_v46  ;;  %v4326_v18 = vld [vmem:[%s5840_s16] ss:$0 sm:$0xff] }
0x14d4   :  { %4720 = vmatmul.mubr.msk.f32.vlgmr.msra.gmra.mrb[38].mxu1 %vm2396_vm4, %v3259_v20 }
0x14d5   :  { %4726 = vmatprep.mubr.msk.f32.mxu1 %vm5072_vm1, %v5071_v8 }
0x14e3   :  { %4971 = vrot.lane.b32.xlu1 %v5585_v2, %s5079_s28 }
0x14e7   :  { %4976 = vrot.lane.b32.xlu1 %v5544_v43, %s5082_s29 }
0x14eb   :  { %3502 = vrot.lane.b32.xlu1 %v5569_v5, %s5082_s29 }
0x155f   :  { %v3256_v21 = vpop.xlane.xlu1 %3255 }
0x1560   :  { %5053 = vrcp.f32 %v3256_v21 }
0x1563   :  { %v4972_v14 = vpop.permute.xlu1 %4971 }
0x1564   :  { %v4974_v22 = vunpack.i.h.bf16 %v4972_v14  ;;  %v4973_v23 = vunpack.i.l.bf16 %v4972_v14 }
0x1566   :  { %v4869_v24 = vpack.c.bf16 %v4974_v22, %v4973_v23 }
0x1567   :  { %v4977_v25 = vpop.permute.xlu1 %4976 }
0x1568   :  { %4870 = vmatpush3.bf16.msra.mxu1 %v4869_v24  ;;  %v4979_v19 = vunpack.i.h.bf16 %v4977_v25  ;;  %v4978_v26 = vunpack.i.l.bf16 %v4977_v25 }
0x1569   :  { %4871 = vmatprep.subr.bf16.mxu1 %v5084_v11 }
0x156a   :  { %v5054_v43 = vpop.eup %5053  ;;  %v4872_v27 = vpack.c.bf16 %v4979_v19, %v4978_v26 }
0x156b   :  { %v3260_v5 = vmul.f32 %v5054_v43, %v5050_v17  ;;  %v3503_v28 = vpop.permute.xlu1 %3502 }
0x156d   :  { %4727 = vmatmul.mubr.msk.f32.vlgmr.msra.gmra.mrb[40].mxu1 %vm2396_vm4, %v3260_v5 }
0x156e   :  { %4738 = vmatprep.mubr.msk.f32.mxu1 %vm5072_vm1, %v5071_v8 }
0x1571   :  { %4874 = vmatpush3.bf16.xpose.msk.msra.mxu1 %vm5540_vm3, %v4872_v27 }
0x1572   :  { %4879 = vmatprep.subr.bf16.mxu1 %v5084_v11 }
0x1578   :  { %4739 = vmatmul.mubr.msk.f32.vlgmr.msra.gmra.mrb[42].mxu1 %vm209_vm2, %v3503_v28 }
0x1579   :  { %4752 = vmatprep.mubr.msk.f32.mxu1 %vm5072_vm1, %v5071_v8 }
0x15a7   :  { %v3336_v29 = vpop.f32.mrb[38].mxu1 }
0x15a8   :  { %v4721_v31 = vpop.f32.mrb[39].mxu1  ;;  %4731 = vmatprep.mubr.msk.f32.mxu0 %vm209_vm2, %v3336_v29 }
0x1640   :  { %v3415_v13 = vpop.f32.mrb[40].mxu1 }
0x1641   :  { %v4728_v36 = vpop.f32.mrb[41].mxu1  ;;  %4732 = vmatmul.mubr.msk.f32.vlgmr.msra.gmra.mrb[26].mxu0 %vm209_vm2, %v3415_v13 }
0x1642   :  { %4878 = vmatpush3.bf16.xpose.msk.msra.mxu0 %vm5540_vm3, %v4876_v35  ;;  %4745 = vmatprep.mubr.msk.f32.mxu0 %vm5072_vm1, %v5071_v8  ;;  %v3987_v35 = vld [vmem:[%s5841_s17 + $0x18] sm:$0xff]  ;;  %v4078_v36 = vld [vmem:[%s5842_s19] sm:$0xff] }
0x1643   :  { %4882 = vmatprep.subr.bf16.mxu0 %v5084_v11  ;;  %v4889_v13 = vpack.c.bf16 %v3987_v35, %v3986_v34  ;;  %v4335_v34 = vld [vmem:[%s5847_s25] ss:$0 sm:$0xff] }
0x1649   :  { %4746 = vmatmul.mubr.msk.f32.vlgmr.msra.gmra.mrb[30].mxu0 %vm209_vm2, %v3585_v37  ;;  %v4079_v37 = vld [vmem:[%s5842_s19 + $0x8] sm:$0xff] }
0x164a   :  { %4759 = vmatprep.mubr.msk.f32.mxu0 %vm5072_vm1, %v5071_v8 }
0x164b   :  { %v3580_v39 = vpop.f32.mrb[42].mxu1 }
0x164c   :  { %v3581_v40 = vadd.f32 %v5596_v4, %v3580_v39  ;;  %v4740_v41 = vpop.f32.mrb[43].mxu1  ;;  %v4080_v39 = vld [vmem:[%s5842_s19 + $0x10] sm:$0xff] }
0x164d   :  { %v4081_v41 = vld [vmem:[%s5842_s19 + $0x18] sm:$0xff] }
0x164e   :  { %v3666_v42 = vsel %vm2396_vm4, %v3581_v40, -inf }
0x164f   :  { %3667 = vmax.xlane.f32.xlu1 %v3666_v42  ;;  %v4897_v42 = vpack.c.bf16 %v4081_v41, %v4080_v39 }
0x16dc   :  { %v3668_v38 = vpop.xlane.xlu1 %3667 }
0x16dd   :  { %v3672_v44 = vsub.f32 %v3581_v40, %v3668_v38  ;;  %v4893_v40 = vpack.c.bf16 %v4079_v37, %v4078_v36  ;;  %v4082_v38 = vld [vmem:[%s5842_s19 + $0x20] sm:$0xff] }
0x16de   :  { %v4336_v36 = vld [vmem:[%s5848_s26] ss:$0 sm:$0xff] }
0x16df   :  { %v3674_v45 = vmul.f32 1.442695, %v3672_v44  ;;  %v4083_v44 = vld [vmem:[%s5842_s19 + $0x28] sm:$0xff] }
0x16e1   :  { %5055 = vpow2.f32 %v3674_v45  ;;  %v4901_v45 = vpack.c.bf16 %v4083_v44, %v4082_v38 }
0x16eb   :  { %v5056_v52 = vpop.eup %5055 }
0x16ec   :  { %v3678_v8 = vsel %vm2396_vm4, %v5056_v52, 0.0 }
0x171c   :  { %v3662_v47 = vpop.f32.mrb[30].mxu0 }
0x171d   :  { %v3663_v11 = vadd.f32 %v5591_v3, %v3662_v47  ;;  %v4747_v49 = vpop.f32.mrb[31].mxu0 }
0x171f   :  { %v3669_v51 = vsel %vm2396_vm4, %v3663_v11, -inf }
0x1720   :  { %3670 = vmax.xlane.f32.xlu0 %v3669_v51 }
0x1724   :  { %3679 = vadd.xlane.f32.xlu0 %v3678_v8 }
0x173a   :  { %4986 = vrot.lane.b32.xlu0 %v5582_v63, %s5082_s29 }
0x17ad   :  { %v3671_v4 = vpop.xlane.xlu0 %3670 }
0x17ae   :  { %v3673_v50 = vsub.f32 %v3663_v11, %v3671_v4 }
0x17b0   :  { %v3676_v53 = vmul.f32 1.442695, %v3673_v50  ;;  %v4327_v50 = vld [vmem:[%s5843_s23] ss:$0 sm:$0xff] }
0x17b1   :  { %v3680_v54 = vpop.xlane.xlu0 %3679 }
0x17b2   :  { %5057 = vpow2.f32 %v3676_v53 }
0x17b3   :  { %5059 = vrcp.f32 %v3680_v54 }
0x17b5   :  { %v4987_v55 = vpop.permute.xlu0 %4986 }
0x17b6   :  { %v4989_v56 = vunpack.i.h.bf16 %v4987_v55  ;;  %v4988_v3 = vunpack.i.l.bf16 %v4987_v55 }
0x17b8   :  { %v4880_v48 = vpack.c.bf16 %v4989_v56, %v4988_v3  ;;  %v4328_v56 = vld [vmem:[%s5844_s24] ss:$0 sm:$0xff] }
0x17ba   :  { %4881 = vmatpush3.bf16.msra.mxu1 %v4880_v48 }
0x17bc   :  { %v5058_v57 = vpop.eup %5057 }
0x17bd   :  { %v5060_v58 = vpop.eup %5059  ;;  %v3681_v59 = vsel %vm2396_vm4, %v5058_v57, 0.0 }
0x17be   :  { %v3686_v60 = vmul.f32 %v5060_v58, %v5056_v52  ;;  %3682 = vadd.xlane.f32.xlu1 %v3681_v59  ;;  %v4084_v59 = vld [vmem:[%s5842_s19 + $0x30] sm:$0xff] }
0x17c0   :  { %4753 = vmatmul.mubr.msk.f32.vlgmr.msra.gmra.mrb[44].mxu1 %vm2396_vm4, %v3686_v60  ;;  %v4085_v60 = vld [vmem:[%s5842_s19 + $0x38] sm:$0xff] }
0x17cf   :  { %4991 = vrot.lane.b32.xlu1 %v5585_v2, %s5082_s29 }
0x184b   :  { %v3683_v63 = vpop.xlane.xlu1 %3682 }
0x184c   :  { %5061 = vrcp.f32 %v3683_v63  ;;  %v4905_v63 = vpack.c.bf16 %v4085_v60, %v4084_v59 }
0x184f   :  { %v4992_v61 = vpop.permute.xlu1 %4991 }
0x1850   :  { %v4994_v62 = vunpack.i.h.bf16 %v4992_v61  ;;  %v4993_v0 = vunpack.i.l.bf16 %v4992_v61  ;;  %v4329_v61 = vld [vmem:[%s5845_s18] ss:$0 sm:$0xff] }
0x1852   :  { %v4883_v1 = vpack.c.bf16 %v4994_v62, %v4993_v0 }
0x1854   :  { %4884 = vmatpush3.bf16.msra.mxu0 %v4883_v1 }
0x1855   :  { %4762 = vmatprep.subr.mxu0 %v2225_v6 }
0x1856   :  { %v5062_v9 = vpop.eup %5061 }
0x1857   :  { %v3687_v10 = vmul.f32 %v5062_v9, %v5058_v57 }
0x1859   :  { %4760 = vmatmul.mubr.msk.f32.vlgmr.msra.gmra.mrb[32].mxu0 %vm2396_vm4, %v3687_v10 }
0x185a   :  { %4763 = vmatpush3.msra.mxu0 %v2225_v6 }
0x185b   :  { %4894 = vmatprep.subr.bf16.mxu0 %v4893_v40 }
0x1893   :  { %v3763_v15 = vpop.f32.mrb[44].mxu1 }
0x1894   :  { %v4754_v16 = vpop.f32.mrb[45].mxu1  ;;  %4764 = vmatprep.mubr.msk.f32.mxu0 %vm209_vm2, %v3763_v15  ;;  %v4332_v15 = vld [vmem:[%s5846_s20] ss:$0 sm:$0xff] }
0x192c   :  { %v3842_v2 = vpop.f32.mrb[32].mxu0 }
0x192d   :  { %v4761_v17 = vpop.f32.mrb[33].mxu0  ;;  %4765 = vmatmul.mubr.msk.f32.vlgmr.msra.gmra.mrb[26].mxu0 %vm209_vm2, %v3842_v2 }
0x192e   :  { %4896 = vmatpush3.bf16.msra.mxu0 %v4893_v40 }
0x192f   :  { %4898 = vmatprep.subr.bf16.mxu0 %v4897_v42 }
0x1932   :  { %4900 = vmatpush3.bf16.msra.mxu0 %v4897_v42 }
0x1933   :  { %4902 = vmatprep.subr.bf16.mxu0 %v4901_v45 }
0x1936   :  { %4904 = vmatpush3.bf16.msra.mxu0 %v4901_v45 }
0x1937   :  { %4906 = vmatprep.subr.bf16.mxu0 %v4905_v63 }
0x193a   :  { %4908 = vmatpush3.bf16.msra.mxu0 %v4905_v63 }
0x1a00   :  { %v4766_v46 = vpop.f32.mrb[26].mxu0 }
0x1a01   :  { %v3937_v20 = vadd.f32 %v4766_v46, %v4326_v18  ;;  %v3918_v7 = vpop.f32.mrb[27].mxu0 }
0x1a02   :  { %v3936_v21 = vadd.f32 %v4326_v18, %v3918_v7 }
0x1a03   :  { %v3939_v14 = vadd.f32 %v3937_v20, %v5520_v30 }
0x1a04   :  { %v3938_v22 = vadd.f32 %v3936_v21, %v5518_v12  ;;  %v3984_v12 = vld [vmem:[%s5841_s17] sm:$0xff] }
0x1a05   :  { %v3945_v23 = vsel %vm101_vm0, %v3939_v14, 0.0  ;;  %v4885_v33 = vpack.c.bf16 %v3985_v32, %v3984_v12 }
0x1a06   :  { %3946 = vadd.xlane.f32.xlu0 %v3945_v23  ;;  %v3942_v24 = vsel %vm101_vm0, %v3938_v22, 0.0 }
0x1a07   :  { %3943 = vadd.xlane.f32.xlu1 %v3942_v24  ;;  %4886 = vmatprep.subr.bf16.mxu1 %v4885_v33 }
0x1a08   :  { %4888 = vmatpush3.bf16.msra.mxu1 %v4885_v33 }
0x1a09   :  { %4890 = vmatprep.subr.bf16.mxu1 %v4889_v13 }
0x1a0c   :  { %4892 = vmatpush3.bf16.msra.mxu1 %v4889_v13 }
0x1a93   :  { %v3947_v25 = vpop.xlane.xlu0 %3946 }
0x1a94   :  { %v3949_v43 = vmul.f32 0.03125, %v3947_v25  ;;  %v3944_v5 = vpop.xlane.xlu1 %3943 }
0x1a95   :  { %v3948_v19 = vmul.f32 0.03125, %v3944_v5 }
0x1a96   :  { %v3951_v26 = vsub.f32 %v3939_v14, %v3949_v43 }
0x1a97   :  { %v3950_v27 = vsub.f32 %v3938_v22, %v3948_v19 }
0x1a98   :  { %v3953_v28 = vmul.f32 %v3951_v26, %v3951_v26 }
0x1a99   :  { %v3952_v29 = vmul.f32 %v3950_v27, %v3950_v27 }
0x1a9a   :  { %v3957_v31 = vsel %vm101_vm0, %v3953_v28, 0.0 }
0x1a9b   :  { %3958 = vadd.xlane.f32.xlu1 %v3957_v31  ;;  %v3954_v30 = vsel %vm101_vm0, %v3952_v29, 0.0 }
0x1a9c   :  { %3955 = vadd.xlane.f32.xlu0 %v3954_v30 }
0x1b28   :  { %v3959_v47 = vpop.xlane.xlu1 %3958 }
0x1b29   :  { %v3961_v11 = vmul.f32 0.03125, %v3959_v47  ;;  %v3956_v49 = vpop.xlane.xlu0 %3955 }
0x1b2a   :  { %v3960_v51 = vmul.f32 0.03125, %v3956_v49 }
0x1b2b   :  { %v3963_v52 = vadd.f32 1e-05, %v3961_v11 }
0x1b2c   :  { %v3962_v8 = vadd.f32 1e-05, %v3960_v51 }
0x1b2d   :  { %5063 = vrsqrt.f32 %v3963_v52 }
0x1b2e   :  { %5065 = vrsqrt.f32 %v3962_v8 }
0x1b37   :  { %v5064_v4 = vpop.eup %5063 }
0x1b38   :  { %v5066_v53 = vpop.eup %5065  ;;  %v3967_v54 = vmul.f32 %v5064_v4, %v3951_v26 }
0x1b39   :  { %v3966_v55 = vmul.f32 %v5066_v53, %v3950_v27 }
0x1b3a   :  { %v3975_v3 = vmul.f32 %v4327_v50, %v3967_v54 }
0x1b3b   :  { %v3974_v48 = vmul.f32 %v4327_v50, %v3966_v55 }
0x1b3c   :  { %v3983_v58 = vadd.f32 %v4328_v56, %v3975_v3 }
0x1b3d   :  { %v3982_v57 = vadd.f32 %v4328_v56, %v3974_v48 }
0x1b3f   :  { %4775 = vmatprep.mubr.msk.f32.mxu1 %vm101_vm0, %v3982_v57 }
0x1b40   :  { %4776 = vmatmul.mubr.msk.f32.vlgmr.msra.gmra.mrb[46].mxu1 %vm101_vm0, %v3983_v58 }
0x1c13   :  { %v4777_v62 = vpop.f32.mrb[46].mxu1 }
0x1c14   :  { %v4073_v0 = vadd.f32 %v4777_v62, %v4329_v61  ;;  %v4067_v1 = vpop.f32.mrb[47].mxu1 }
0x1c15   :  { %v4068_v6 = vadd.f32 %v4329_v61, %v4067_v1 }
0x1c16   :  { %v4077_v10 = vmax.f32 %v4073_v0, 0.0 }
0x1c17   :  { %v4076_v9 = vmax.f32 %v4068_v6, 0.0 }
0x1c19   :  { %4794 = vmatprep.mubr.msk.f32.mxu0 %vm4093_vm5, %v4076_v9 }
0x1c1a   :  { %4795 = vmatmul.mubr.msk.f32.vlgmr.msra.gmra.mrb[34].mxu0 %vm4093_vm5, %v4077_v10 }
0x1ced   :  { %v4796_v16 = vpop.f32.mrb[34].mxu0 }
0x1cee   :  { %v4172_v2 = vadd.f32 %v4796_v16, %v4332_v15  ;;  %v4166_v17 = vpop.f32.mrb[35].mxu0 }
0x1cef   :  { %v4167_v18 = vadd.f32 %v4332_v15, %v4166_v17 }
0x1cf0   :  { %v4176_v46 = vadd.f32 %v4172_v2, %v3983_v58 }
0x1cf1   :  { %v4175_v20 = vadd.f32 %v4167_v18, %v3982_v57 }
0x1cf2   :  { %v4182_v7 = vsel %vm101_vm0, %v4176_v46, 0.0 }
0x1cf3   :  { %4183 = vadd.xlane.f32.xlu1 %v4182_v7  ;;  %v4179_v21 = vsel %vm101_vm0, %v4175_v20, 0.0 }
0x1cf4   :  { %4180 = vadd.xlane.f32.xlu0 %v4179_v21 }
0x1d80   :  { %v4184_v14 = vpop.xlane.xlu1 %4183 }
0x1d81   :  { %v4186_v22 = vmul.f32 0.03125, %v4184_v14  ;;  %v4181_v23 = vpop.xlane.xlu0 %4180 }
0x1d82   :  { %v4185_v24 = vmul.f32 0.03125, %v4181_v23 }
0x1d83   :  { %v4188_v25 = vsub.f32 %v4176_v46, %v4186_v22 }
0x1d84   :  { %v4187_v43 = vsub.f32 %v4175_v20, %v4185_v24 }
0x1d85   :  { %v4190_v5 = vmul.f32 %v4188_v25, %v4188_v25 }
0x1d86   :  { %v4189_v19 = vmul.f32 %v4187_v43, %v4187_v43 }
0x1d87   :  { %v4194_v26 = vsel %vm101_vm0, %v4190_v5, 0.0 }
0x1d88   :  { %4195 = vadd.xlane.f32.xlu1 %v4194_v26  ;;  %v4191_v27 = vsel %vm101_vm0, %v4189_v19, 0.0 }
0x1d89   :  { %4192 = vadd.xlane.f32.xlu0 %v4191_v27 }
0x1e15   :  { %v4196_v28 = vpop.xlane.xlu1 %4195 }
0x1e16   :  { %v4198_v29 = vmul.f32 0.03125, %v4196_v28  ;;  %v4193_v31 = vpop.xlane.xlu0 %4192 }
0x1e17   :  { %v4197_v30 = vmul.f32 0.03125, %v4193_v31 }
0x1e18   :  { %v4200_v12 = vadd.f32 1e-05, %v4198_v29 }
0x1e19   :  { %v4199_v32 = vadd.f32 1e-05, %v4197_v30 }
0x1e1a   :  { %5067 = vrsqrt.f32 %v4200_v12 }
0x1e1b   :  { %5069 = vrsqrt.f32 %v4199_v32 }
0x1e24   :  { %v5068_v33 = vpop.eup %5067 }
0x1e25   :  { %v5070_v35 = vpop.eup %5069  ;;  %v4204_v13 = vmul.f32 %v5068_v33, %v4188_v25 }
0x1e26   :  { %v4203_v37 = vmul.f32 %v5070_v35, %v4187_v43 }
0x1e27   :  { %v4212_v39 = vmul.f32 %v4335_v34, %v4204_v13 }
0x1e28   :  { %v4211_v40 = vmul.f32 %v4335_v34, %v4203_v37 }
0x1e29   :  { %v4220_v41 = vadd.f32 %v4336_v36, %v4212_v39 }
0x1e2a   :  { %v4219_v42 = vadd.f32 %v4336_v36, %v4211_v40 }
0x1e2b   :  { %4222 = vst.msk [vmem:[%s5849_s27 + $0x8] sm:$0xff] %vm101_vm0, %v4220_v41 }
0x1e2c   :  { %4221 = vst.msk [vmem:[%s5849_s27] sm:$0xff] %vm101_vm0, %v4219_v42 }

</bundles_post_ra>
